<compile_context>
chip_gen: v7x
topology: tpu7x:2x2x1
jax: 0.10.0
libtpu: 0.0.40
codegen_flags: <defaults>
</compile_context>

<pallas_src>
import functools

import numpy as np

import jax
import jax.numpy as jnp
from jax.experimental import pallas as pl
from jax.experimental.pallas import tpu as pltpu


VMEM_LIMIT = 32 * 1024 * 1024


# ----------------------------------------------------------------------------
# Fused forward kernel
# ----------------------------------------------------------------------------
def _fused_forward_kernel(*refs, n_enc, T, H, BB):
    """Full forward for BB sequences: encoder GEMM chain -> LSTM -> critic."""
    obs_ref, h0_ref, c0_ref = refs[:3]
    idx = 3
    enc = []
    for _ in range(n_enc):
        enc.append((refs[idx], refs[idx + 1]))
        idx += 2
    wih_ref, bl_ref, whh_ref, wcr_ref, bcr_ref = refs[idx:idx + 5]
    feats_ref, vf_ref, hT_ref, cT_ref = refs[idx + 5:idx + 9]

    d_in = obs_ref.shape[-1]

    # ---- encoder: folded-conv GEMMs + FC stack (all ReLU) ----
    x = obs_ref[...].reshape(BB * T, d_in)                 # bf16, VMEM resident
    for w_ref, b_ref in enc:
        y = jnp.dot(x, w_ref[...], preferred_element_type=jnp.float32) + b_ref[...]
        x = jnp.maximum(y, 0.0).astype(jnp.bfloat16)

    # ---- LSTM input projection hoisted out of the recurrence ----
    gx = (jnp.dot(x, wih_ref[...], preferred_element_type=jnp.float32)
          + bl_ref[...])                                   # (BB*T, 4H) f32
    gx = gx.reshape(BB, T, 4 * H)

    whh = whh_ref[...]                                     # (H, 4H) bf16, resident

    # Single-sigmoid gate nonlinearity: tanh(z) = 2*sigmoid(2z) - 1; the x2
    # pre-scale of the g-gate is already folded into W_ih / W_hh / bias.
    lane = jax.lax.broadcasted_iota(jnp.int32, (1, 4 * H), 1)
    is_g = (lane >= 2 * H) & (lane < 3 * H)
    post_scale = jnp.where(is_g, 2.0, 1.0)                 # built once, outside loop
    post_shift = jnp.where(is_g, -1.0, 0.0)

    h = h0_ref[...].reshape(BB, H)                         # f32 state
    c = c0_ref[...].reshape(BB, H)
    hs = []
    for t in range(T):                                     # static unroll (T small)
        gates = (jnp.dot(h.astype(whh.dtype), whh,
                         preferred_element_type=jnp.float32)
                 + gx[:, t, :])                            # (BB, 4H), lane-dense 128
        act = jax.nn.sigmoid(gates) * post_scale + post_shift   # one EUP pass / step
        i_g = act[:, 0:H]
        f_g = act[:, H:2 * H]
        g_g = act[:, 2 * H:3 * H]
        o_g = act[:, 3 * H:4 * H]
        c = f_g * c + i_g * g_g
        h = o_g * jnp.tanh(c)
        hs.append(h)                                       # stays in vregs

    hT_ref[...] = h.reshape(BB, 1, H)
    cT_ref[...] = c.reshape(BB, 1, H)

    feats = jnp.concatenate(hs, axis=-1)                   # (BB, T*H) lane-dense
    feats_ref[...] = feats.reshape(BB, 1, T * H)           # one unmasked store

    # Fused critic head: block-diagonal (T*H, T) weight built on the host.
    vf = (jnp.dot(feats, wcr_ref[...], preferred_element_type=jnp.float32)
          + bcr_ref[...])                                  # (BB, T)
    vf_ref[...] = vf.reshape(BB, 1, T)


# ----------------------------------------------------------------------------
# Wrapper
# ----------------------------------------------------------------------------
def _tensorcores_per_chip():
    """Best-effort TC-per-chip query; used to gate the batch-parallel grid."""
    try:
        info = pltpu.get_tpu_info()
        for name in ("num_cores", "num_tensorcores", "cores_per_chip",
                     "num_cores_per_chip"):
            v = getattr(info, name, None)
            if isinstance(v, int) and v > 0:
                return v
    except Exception:
        pass
    try:
        if "v7" in jax.devices()[0].device_kind.lower():
            return 2
    except Exception:
        pass
    return 1


def baseline_forward(obs, h0, c0, kp, B, T, batch_block=None):
    """Returns (output_features (B*T, H_lstm), [h_T, c_T], value (B*T,))."""
    H = h0.shape[-1]
    d_in = kp["din"]
    if batch_block is None:
        # v7x (2 TCs): one sequence per grid step, "parallel" -> both cores.
        # single-TC chips: whole batch in one step (no duplicate weight pushes).
        batch_block = 1 if (_tensorcores_per_chip() > 1 and B > 1) else B
    bb = batch_block
    assert B % bb == 0

    # obs values are integer 0..255 -> exact in bf16; /255 is folded into conv1.
    obs_r = obs.reshape(B, T, d_in).astype(jnp.bfloat16)
    h0_r = h0.reshape(B, 1, H).astype(jnp.float32)
    c0_r = c0.reshape(B, 1, H).astype(jnp.float32)

    n_enc = len(kp["enc"])
    inputs = [obs_r, h0_r, c0_r]
    for w, b in kp["enc"]:
        inputs += [w, b]
    inputs += [kp["lstm_wih"], kp["lstm_b"], kp["lstm_whh"],
               kp["critic_w"], kp["critic_b"]]

    def _const_spec(a):
        nd = a.ndim
        return pl.BlockSpec(a.shape, lambda *_args, _n=nd: (0,) * _n)

    in_specs = [
        pl.BlockSpec((bb, T, d_in), lambda i: (i, 0, 0)),
        pl.BlockSpec((bb, 1, H), lambda i: (i, 0, 0)),
        pl.BlockSpec((bb, 1, H), lambda i: (i, 0, 0)),
    ] + [_const_spec(a) for a in inputs[3:]]

    out_shape = (
        jax.ShapeDtypeStruct((B, 1, T * H), jnp.float32),   # feats (lane-dense)
        jax.ShapeDtypeStruct((B, 1, T), jnp.float32),       # value function
        jax.ShapeDtypeStruct((B, 1, H), jnp.float32),       # h_T
        jax.ShapeDtypeStruct((B, 1, H), jnp.float32),       # c_T
    )
    out_specs = (
        pl.BlockSpec((bb, 1, T * H), lambda i: (i, 0, 0)),
        pl.BlockSpec((bb, 1, T), lambda i: (i, 0, 0)),
        pl.BlockSpec((bb, 1, H), lambda i: (i, 0, 0)),
        pl.BlockSpec((bb, 1, H), lambda i: (i, 0, 0)),
    )

    feats, vf, h_t, c_t = pl.pallas_call(
        functools.partial(_fused_forward_kernel, n_enc=n_enc, T=T, H=H, BB=bb),
        out_shape=out_shape,
        grid=(B // bb,),
        in_specs=in_specs,
        out_specs=out_specs,
        compiler_params=pltpu.CompilerParams(
            dimension_semantics=("parallel",),
            vmem_limit_bytes=VMEM_LIMIT),
    )(*inputs)

    return (feats.reshape(B * T, H),
            (h_t.reshape(B, H), c_t.reshape(B, H)),
            vf.reshape(B * T))


# ----------------------------------------------------------------------------
# Host-side parameter preparation (folds convs, scales, permutations)
# ----------------------------------------------------------------------------
def _fold_conv(wmat, bvec, stride, in_h, in_w, scale=1.0):
    """Fold a VALID conv (+ optional input scale) into a dense HWC_in->HWC_out matrix."""
    wmat = np.asarray(wmat, np.float32)
    bvec = np.asarray(bvec, np.float32)
    cout, cin, kh, kw = wmat.shape
    oh = (in_h - kh) // stride + 1
    ow = (in_w - kw) // stride + 1
    m = np.zeros((in_h * in_w * cin, oh * ow * cout), np.float32)
    wblk = np.transpose(wmat, (1, 0, 2, 3)) * scale             # (cin, cout, kh, kw)
    for oy in range(oh):
        for ox in range(ow):
            col0 = (oy * ow + ox) * cout
            for ki in range(kh):
                for kj in range(kw):
                    row0 = ((oy * stride + ki) * in_w + (ox * stride + kj)) * cin
                    m[row0:row0 + cin, col0:col0 + cout] = wblk[:, :, ki, kj]
    b_tiled = np.tile(bvec, oh * ow)[None, :]                   # (1, oh*ow*cout)
    return m, b_tiled, oh, ow


def prepare_params(pt, input_hw, T):
    """Convert PyTorch-layout params into fused-kernel layout."""
    h_img, w_img, c_in = input_hw
    enc = []
    h, w, c = h_img, w_img, c_in
    for li, (wmat, bvec, s) in enumerate(pt["conv"]):
        scale = (1.0 / 255.0) if li == 0 else 1.0       # fold uint8 normalization
        m, bt, oh, ow = _fold_conv(wmat, bvec, s, h, w, scale)
        enc.append((jnp.asarray(m, jnp.bfloat16), jnp.asarray(bt, jnp.float32)))
        h, w, c = oh, ow, wmat.shape[0]
    # FC: fold PyTorch's NCHW flatten order into a row permutation of the first
    # weight (kernel produces conv output in HWC order).
    for li, (wmat, bvec) in enumerate(pt["fc"]):
        wk = np.asarray(wmat, np.float32).T                     # (in, out)
        if li == 0:
            hid = wmat.shape[0]
            wk = wk.reshape(c, h, w, hid).transpose(1, 2, 0, 3).reshape(c * h * w, hid)
        enc.append((jnp.asarray(wk, jnp.bfloat16),
                    jnp.asarray(np.asarray(bvec, np.float32)[None, :])))

    w_ih, w_hh, b_ih, b_hh = (np.asarray(a, np.float32) for a in pt["lstm"])
    h_l = w_hh.shape[1]
    gscale = np.ones((4 * h_l,), np.float32)
    gscale[2 * h_l:3 * h_l] = 2.0       # pre-scale g-gate: tanh(z)=2*sigmoid(2z)-1

    w_cr, b_cr = (np.asarray(a, np.float32) for a in pt["critic"])
    wcr_big = np.zeros((T * h_l, T), np.float32)                # block-diagonal critic
    for t in range(T):
        wcr_big[t * h_l:(t + 1) * h_l, t] = w_cr[0]

    return {
        "enc": enc,
        "din": h_img * w_img * c_in,
        "lstm_wih": jnp.asarray((w_ih * gscale[:, None]).T, jnp.bfloat16),   # (D, 4H)
        "lstm_whh": jnp.asarray((w_hh * gscale[:, None]).T, jnp.bfloat16),   # (H, 4H)
        "lstm_b": jnp.asarray(((b_ih + b_hh) * gscale)[None, :], jnp.float32),
        "critic_w": jnp.asarray(wcr_big),                                    # (T*H, T)
        "critic_b": jnp.asarray(np.tile(b_cr.reshape(1, 1), (1, T))),        # (1, T)
    }


# ----------------------------------------------------------------------------
# Pure-JAX reference built directly from the PyTorch-layout parameters
# ----------------------------------------------------------------------------
def reference_forward(obs, h0, c0, pt, B, T):
    x = obs.astype(jnp.float32) / 255.0
    x = jnp.transpose(x, (0, 3, 1, 2))                          # NCHW (PermuteChannels)
    for (w, b, s) in pt["conv"]:
        x = jax.lax.conv_general_dilated(
            x, w, window_strides=(s, s), padding="VALID",
            dimension_numbers=("NCHW", "OIHW", "NCHW"))
        x = jnp.maximum(x + b[None, :, None, None], 0.0)
    x = x.reshape(x.shape[0], -1)                               # nn.Flatten on NCHW
    for (w, b) in pt["fc"]:
        x = jnp.maximum(x @ w.T + b[None, :], 0.0)
    w_ih, w_hh, b_ih, b_hh = pt["lstm"]
    H = h0.shape[-1]
    xs = x.reshape(B, T, -1)
    h, c = h0, c0
    outs = []
    for t in range(T):
        gates = xs[:, t, :] @ w_ih.T + h @ w_hh.T + b_ih[None, :] + b_hh[None, :]
        i_g = jax.nn.sigmoid(gates[:, 0:H])
        f_g = jax.nn.sigmoid(gates[:, H:2 * H])
        g_g = jnp.tanh(gates[:, 2 * H:3 * H])
        o_g = jax.nn.sigmoid(gates[:, 3 * H:4 * H])
        c = f_g * c + i_g * g_g
        h = o_g * jnp.tanh(c)
        outs.append(h)
    feats = jnp.stack(outs, axis=1)                             # (B, T, H)
    w_cr, b_cr = pt["critic"]
    vf = (feats @ w_cr.T + b_cr[None, None, :]).reshape(-1)
    return feats.reshape(B * T, H), (h, c), vf


# ----------------------------------------------------------------------------
# Main
# ----------------------------------------------------------------------------
if __name__ == "__main__":
    B, T = 2, 8
    Himg = Wimg = 16
    Cin = 4
    conv_filters = [(8, 4, 2), (16, 3, 2)]       # (out_ch, kernel, stride), VALID pad
    fcnet_hiddens = [32]
    lstm_hidden = 32

    key = jax.random.PRNGKey(0)
    ks = list(jax.random.split(key, 20))
    ki = 0

    # ---- PyTorch-layout parameters ----
    pt = {"conv": [], "fc": []}
    c, h, w = Cin, Himg, Wimg
    for (cout, k, s) in conv_filters:
        wmat = 0.05 * jax.random.normal(ks[ki], (cout, c, k, k), jnp.float32); ki += 1
        bvec = 0.05 * jax.random.normal(ks[ki], (cout,), jnp.float32); ki += 1
        pt["conv"].append((wmat, bvec, s))
        h = (h - k) // s + 1
        w = (w - k) // s + 1
        c = cout
    conv_out_dim = c * h * w

    d = conv_out_dim
    for hdim in fcnet_hiddens:
        wmat = 0.05 * jax.random.normal(ks[ki], (hdim, d), jnp.float32); ki += 1
        bvec = 0.05 * jax.random.normal(ks[ki], (hdim,), jnp.float32); ki += 1
        pt["fc"].append((wmat, bvec))
        d = hdim

    ortho = jax.nn.initializers.orthogonal()
    w_ih = ortho(ks[ki], (4 * lstm_hidden, d)).astype(jnp.float32); ki += 1
    w_hh = ortho(ks[ki], (4 * lstm_hidden, lstm_hidden)).astype(jnp.float32); ki += 1
    b_ih = 0.05 * jax.random.normal(ks[ki], (4 * lstm_hidden,), jnp.float32); ki += 1
    b_hh = 0.05 * jax.random.normal(ks[ki], (4 * lstm_hidden,), jnp.float32); ki += 1
    pt["lstm"] = (w_ih, w_hh, b_ih, b_hh)
    w_cr = ortho(ks[ki], (1, lstm_hidden)).astype(jnp.float32); ki += 1
    b_cr = 0.05 * jax.random.normal(ks[ki], (1,), jnp.float32); ki += 1
    pt["critic"] = (w_cr, b_cr)

    kp = prepare_params(pt, input_hw=(Himg, Wimg, Cin), T=T)

    obs = jax.random.randint(ks[ki], (B * T, Himg, Wimg, Cin), 0, 256,
                             dtype=jnp.int32).astype(jnp.float32); ki += 1
    h0 = 0.1 * jax.random.normal(ks[ki], (B, lstm_hidden), jnp.float32); ki += 1
    c0 = 0.1 * jax.random.normal(ks[ki], (B, lstm_hidden), jnp.float32); ki += 1

    ref_feats, (rh, rc), ref_vf = reference_forward(obs, h0, c0, pt, B, T)

    tol = dict(atol=2e-2, rtol=2e-2)             # bf16 MXU operands, f32 accumulation
    auto_bb = 1 if (_tensorcores_per_chip() > 1 and B > 1) else B
    for bb in sorted({1, B, auto_bb}):           # exercise both grid layouts
        feats, (hf, cf), vf = baseline_forward(obs, h0, c0, kp, B, T, batch_block=bb)
        jax.block_until_ready((feats, hf, cf, vf))
        assert feats.shape == (B * T, lstm_hidden)
        assert hf.shape == (B, lstm_hidden) and cf.shape == (B, lstm_hidden)
        assert vf.shape == (B * T,)
        assert jnp.allclose(feats, ref_feats, **tol)
        assert jnp.allclose(hf, rh, **tol)
        assert jnp.allclose(cf, rc, **tol)
        assert jnp.allclose(vf, ref_vf, **tol)

    print("KERNEL_OK")
</pallas_src>

<mosaic_0001>
module attributes {stable_mosaic.version = 11 : i64} {
  func.func @_fused_forward_kernel(%arg0: i32, %arg1: memref<1x8x1024xbf16, #tpu.memory_space<vmem>>, %arg2: memref<1x1x32xf32, #tpu.memory_space<vmem>>, %arg3: memref<1x1x32xf32, #tpu.memory_space<vmem>>, %arg4: memref<1024x392xbf16, #tpu.memory_space<vmem>>, %arg5: memref<1x392xf32, #tpu.memory_space<vmem>>, %arg6: memref<392x144xbf16, #tpu.memory_space<vmem>>, %arg7: memref<1x144xf32, #tpu.memory_space<vmem>>, %arg8: memref<144x32xbf16, #tpu.memory_space<vmem>>, %arg9: memref<1x32xf32, #tpu.memory_space<vmem>>, %arg10: memref<32x128xbf16, #tpu.memory_space<vmem>>, %arg11: memref<1x128xf32, #tpu.memory_space<vmem>>, %arg12: memref<32x128xbf16, #tpu.memory_space<vmem>>, %arg13: memref<256x8xf32, #tpu.memory_space<vmem>>, %arg14: memref<1x8xf32, #tpu.memory_space<vmem>>, %arg15: memref<1x1x256xf32, #tpu.memory_space<vmem>>, %arg16: memref<1x1x8xf32, #tpu.memory_space<vmem>>, %arg17: memref<1x1x32xf32, #tpu.memory_space<vmem>>, %arg18: memref<1x1x32xf32, #tpu.memory_space<vmem>>) attributes {dimension_semantics = [#tpu.dimension_semantics<parallel>], iteration_bounds = array<i64: 2>, scalar_prefetch = 0 : i64, scratch_operands = 0 : i64, tpu.core_type = #tpu.core_type<tc>, window_params = [{transform_indices = @transform_0, window_bounds = array<i64: 1, 8, 1024>}, {transform_indices = @transform_1, window_bounds = array<i64: 1, 1, 32>}, {transform_indices = @transform_2, window_bounds = array<i64: 1, 1, 32>}, {pipeline_mode = #tpu.pipeline_mode<synchronous>, transform_indices = @transform_3, window_bounds = array<i64: 1024, 392>}, {pipeline_mode = #tpu.pipeline_mode<synchronous>, transform_indices = @transform_4, window_bounds = array<i64: 1, 392>}, {pipeline_mode = #tpu.pipeline_mode<synchronous>, transform_indices = @transform_5, window_bounds = array<i64: 392, 144>}, {pipeline_mode = #tpu.pipeline_mode<synchronous>, transform_indices = @transform_6, window_bounds = array<i64: 1, 144>}, {pipeline_mode = #tpu.pipeline_mode<synchronous>, transform_indices = @transform_7, window_bounds = array<i64: 144, 32>}, {pipeline_mode = #tpu.pipeline_mode<synchronous>, transform_indices = @transform_8, window_bounds = array<i64: 1, 32>}, {pipeline_mode = #tpu.pipeline_mode<synchronous>, transform_indices = @transform_9, window_bounds = array<i64: 32, 128>}, {pipeline_mode = #tpu.pipeline_mode<synchronous>, transform_indices = @transform_10, window_bounds = array<i64: 1, 128>}, {pipeline_mode = #tpu.pipeline_mode<synchronous>, transform_indices = @transform_11, window_bounds = array<i64: 32, 128>}, {pipeline_mode = #tpu.pipeline_mode<synchronous>, transform_indices = @transform_12, window_bounds = array<i64: 256, 8>}, {pipeline_mode = #tpu.pipeline_mode<synchronous>, transform_indices = @transform_13, window_bounds = array<i64: 1, 8>}, {transform_indices = @transform_14, window_bounds = array<i64: 1, 1, 256>}, {transform_indices = @transform_15, window_bounds = array<i64: 1, 1, 8>}, {transform_indices = @transform_16, window_bounds = array<i64: 1, 1, 32>}, {transform_indices = @transform_17, window_bounds = array<i64: 1, 1, 32>}]} {
    %c0 = arith.constant 0 : index
    %c0_0 = arith.constant 0 : index
    %c0_1 = arith.constant 0 : index
    %0 = vector.load %arg1[%c0, %c0_0, %c0_1] : memref<1x8x1024xbf16, #tpu.memory_space<vmem>>, vector<1x8x1024xbf16>
    %1 = vector.shape_cast %0 : vector<1x8x1024xbf16> to vector<8x1024xbf16>
    %c0_2 = arith.constant 0 : index
    %c0_3 = arith.constant 0 : index
    %2 = vector.load %arg4[%c0_2, %c0_3] : memref<1024x392xbf16, #tpu.memory_space<vmem>>, vector<1024x392xbf16>
    %cst = arith.constant dense<0.000000e+00> : vector<8x392xf32>
    %3 = tpu.matmul %1, %2, %cst {dimension_numbers = #tpu.dot_dimension_numbers<[1], [0], [0], [1], [0, 0, 1, 1], [], []>} : vector<8x1024xbf16>, vector<1024x392xbf16>, vector<8x392xf32> -> vector<8x392xf32>
    %c0_4 = arith.constant 0 : index
    %c0_5 = arith.constant 0 : index
    %4 = vector.load %arg5[%c0_4, %c0_5] : memref<1x392xf32, #tpu.memory_space<vmem>>, vector<1x392xf32>
    %5 = vector.broadcast %4 : vector<1x392xf32> to vector<8x392xf32>
    %6 = arith.addf %3, %5 : vector<8x392xf32>
    %cst_6 = arith.constant 0.000000e+00 : f32
    %7 = vector.broadcast %cst_6 : f32 to vector<8x392xf32>
    %8 = arith.maximumf %6, %7 : vector<8x392xf32>
    %9 = arith.truncf %8 : vector<8x392xf32> to vector<8x392xbf16>
    %c0_7 = arith.constant 0 : index
    %c0_8 = arith.constant 0 : index
    %10 = vector.load %arg6[%c0_7, %c0_8] : memref<392x144xbf16, #tpu.memory_space<vmem>>, vector<392x144xbf16>
    %cst_9 = arith.constant dense<0.000000e+00> : vector<8x144xf32>
    %11 = tpu.matmul %9, %10, %cst_9 {dimension_numbers = #tpu.dot_dimension_numbers<[1], [0], [0], [1], [0, 0, 1, 1], [], []>} : vector<8x392xbf16>, vector<392x144xbf16>, vector<8x144xf32> -> vector<8x144xf32>
    %c0_10 = arith.constant 0 : index
    %c0_11 = arith.constant 0 : index
    %12 = vector.load %arg7[%c0_10, %c0_11] : memref<1x144xf32, #tpu.memory_space<vmem>>, vector<1x144xf32>
    %13 = vector.broadcast %12 : vector<1x144xf32> to vector<8x144xf32>
    %14 = arith.addf %11, %13 : vector<8x144xf32>
    %cst_12 = arith.constant 0.000000e+00 : f32
    %15 = vector.broadcast %cst_12 : f32 to vector<8x144xf32>
    %16 = arith.maximumf %14, %15 : vector<8x144xf32>
    %17 = arith.truncf %16 : vector<8x144xf32> to vector<8x144xbf16>
    %c0_13 = arith.constant 0 : index
    %c0_14 = arith.constant 0 : index
    %18 = vector.load %arg8[%c0_13, %c0_14] : memref<144x32xbf16, #tpu.memory_space<vmem>>, vector<144x32xbf16>
    %cst_15 = arith.constant dense<0.000000e+00> : vector<8x32xf32>
    %19 = tpu.matmul %17, %18, %cst_15 {dimension_numbers = #tpu.dot_dimension_numbers<[1], [0], [0], [1], [0, 0, 1, 1], [], []>} : vector<8x144xbf16>, vector<144x32xbf16>, vector<8x32xf32> -> vector<8x32xf32>
    %c0_16 = arith.constant 0 : index
    %c0_17 = arith.constant 0 : index
    %20 = vector.load %arg9[%c0_16, %c0_17] : memref<1x32xf32, #tpu.memory_space<vmem>>, vector<1x32xf32>
    %21 = vector.broadcast %20 : vector<1x32xf32> to vector<8x32xf32>
    %22 = arith.addf %19, %21 : vector<8x32xf32>
    %cst_18 = arith.constant 0.000000e+00 : f32
    %23 = vector.broadcast %cst_18 : f32 to vector<8x32xf32>
    %24 = arith.maximumf %22, %23 : vector<8x32xf32>
    %25 = arith.truncf %24 : vector<8x32xf32> to vector<8x32xbf16>
    %c0_19 = arith.constant 0 : index
    %c0_20 = arith.constant 0 : index
    %26 = vector.load %arg10[%c0_19, %c0_20] : memref<32x128xbf16, #tpu.memory_space<vmem>>, vector<32x128xbf16>
    %cst_21 = arith.constant dense<0.000000e+00> : vector<8x128xf32>
    %27 = tpu.matmul %25, %26, %cst_21 {dimension_numbers = #tpu.dot_dimension_numbers<[1], [0], [0], [1], [0, 0, 1, 1], [], []>} : vector<8x32xbf16>, vector<32x128xbf16>, vector<8x128xf32> -> vector<8x128xf32>
    %c0_22 = arith.constant 0 : index
    %c0_23 = arith.constant 0 : index
    %28 = vector.load %arg11[%c0_22, %c0_23] : memref<1x128xf32, #tpu.memory_space<vmem>>, vector<1x128xf32>
    %29 = vector.broadcast %28 : vector<1x128xf32> to vector<8x128xf32>
    %30 = arith.addf %27, %29 : vector<8x128xf32>
    %31 = vector.shape_cast %30 : vector<8x128xf32> to vector<1x8x128xf32>
    %c0_24 = arith.constant 0 : index
    %c0_25 = arith.constant 0 : index
    %32 = vector.load %arg12[%c0_24, %c0_25] : memref<32x128xbf16, #tpu.memory_space<vmem>>, vector<32x128xbf16>
    %33 = tpu.iota {dimensions = array<i32: 1>} : vector<1x128xi32>
    %c64_i32 = arith.constant 64 : i32
    %34 = vector.broadcast %c64_i32 : i32 to vector<1x128xi32>
    %35 = arith.cmpi sge, %33, %34 : vector<1x128xi32>
    %c96_i32 = arith.constant 96 : i32
    %36 = vector.broadcast %c96_i32 : i32 to vector<1x128xi32>
    %37 = arith.cmpi slt, %33, %36 : vector<1x128xi32>
    %38 = arith.andi %35, %37 : vector<1x128xi1>
    %cst_26 = arith.constant 2.000000e+00 : f32
    %cst_27 = arith.constant 1.000000e+00 : f32
    %39 = vector.broadcast %cst_26 : f32 to vector<1x128xf32>
    %40 = vector.broadcast %cst_27 : f32 to vector<1x128xf32>
    %41 = arith.select %38, %39, %40 : vector<1x128xi1>, vector<1x128xf32>
    %cst_28 = arith.constant -1.000000e+00 : f32
    %cst_29 = arith.constant 0.000000e+00 : f32
    %42 = vector.broadcast %cst_28 : f32 to vector<1x128xf32>
    %43 = vector.broadcast %cst_29 : f32 to vector<1x128xf32>
    %44 = arith.select %38, %42, %43 : vector<1x128xi1>, vector<1x128xf32>
    %c0_30 = arith.constant 0 : index
    %c0_31 = arith.constant 0 : index
    %c0_32 = arith.constant 0 : index
    %45 = vector.load %arg2[%c0_30, %c0_31, %c0_32] : memref<1x1x32xf32, #tpu.memory_space<vmem>>, vector<1x1x32xf32>
    %46 = vector.shape_cast %45 : vector<1x1x32xf32> to vector<1x32xf32>
    %c0_33 = arith.constant 0 : index
    %c0_34 = arith.constant 0 : index
    %c0_35 = arith.constant 0 : index
    %47 = vector.load %arg3[%c0_33, %c0_34, %c0_35] : memref<1x1x32xf32, #tpu.memory_space<vmem>>, vector<1x1x32xf32>
    %48 = vector.shape_cast %47 : vector<1x1x32xf32> to vector<1x32xf32>
    %49 = arith.truncf %46 : vector<1x32xf32> to vector<1x32xbf16>
    %cst_36 = arith.constant dense<0.000000e+00> : vector<1x128xf32>
    %50 = tpu.matmul %49, %32, %cst_36 {dimension_numbers = #tpu.dot_dimension_numbers<[1], [0], [0], [1], [0, 0, 1, 1], [], []>} : vector<1x32xbf16>, vector<32x128xbf16>, vector<1x128xf32> -> vector<1x128xf32>
    %51 = vector.extract_strided_slice %31 {offsets = [0, 0, 0], sizes = [1, 1, 128], strides = [1, 1, 1]} : vector<1x8x128xf32> to vector<1x1x128xf32>
    %52 = vector.shape_cast %51 : vector<1x1x128xf32> to vector<1x128xf32>
    %53 = arith.addf %50, %52 : vector<1x128xf32>
    %54 = arith.negf %53 : vector<1x128xf32>
    %55 = math.exp %54 : vector<1x128xf32>
    %cst_37 = arith.constant 1.000000e+00 : f32
    %56 = vector.broadcast %cst_37 : f32 to vector<1x128xf32>
    %57 = arith.addf %56, %55 : vector<1x128xf32>
    %58 = arith.divf %56, %57 : vector<1x128xf32>
    %59 = arith.mulf %58, %41 : vector<1x128xf32>
    %60 = arith.addf %59, %44 : vector<1x128xf32>
    %61 = vector.extract_strided_slice %60 {offsets = [0, 0], sizes = [1, 32], strides = [1, 1]} : vector<1x128xf32> to vector<1x32xf32>
    %62 = vector.extract_strided_slice %60 {offsets = [0, 32], sizes = [1, 32], strides = [1, 1]} : vector<1x128xf32> to vector<1x32xf32>
    %63 = vector.extract_strided_slice %60 {offsets = [0, 64], sizes = [1, 32], strides = [1, 1]} : vector<1x128xf32> to vector<1x32xf32>
    %64 = vector.extract_strided_slice %60 {offsets = [0, 96], sizes = [1, 32], strides = [1, 1]} : vector<1x128xf32> to vector<1x32xf32>
    %65 = arith.mulf %62, %48 : vector<1x32xf32>
    %66 = arith.mulf %61, %63 : vector<1x32xf32>
    %67 = arith.addf %65, %66 : vector<1x32xf32>
    %68 = math.tanh %67 : vector<1x32xf32>
    %69 = arith.mulf %64, %68 : vector<1x32xf32>
    %70 = arith.truncf %69 : vector<1x32xf32> to vector<1x32xbf16>
    %cst_38 = arith.constant dense<0.000000e+00> : vector<1x128xf32>
    %71 = tpu.matmul %70, %32, %cst_38 {dimension_numbers = #tpu.dot_dimension_numbers<[1], [0], [0], [1], [0, 0, 1, 1], [], []>} : vector<1x32xbf16>, vector<32x128xbf16>, vector<1x128xf32> -> vector<1x128xf32>
    %72 = vector.extract_strided_slice %31 {offsets = [0, 1, 0], sizes = [1, 1, 128], strides = [1, 1, 1]} : vector<1x8x128xf32> to vector<1x1x128xf32>
    %73 = vector.shape_cast %72 : vector<1x1x128xf32> to vector<1x128xf32>
    %74 = arith.addf %71, %73 : vector<1x128xf32>
    %75 = arith.negf %74 : vector<1x128xf32>
    %76 = math.exp %75 : vector<1x128xf32>
    %cst_39 = arith.constant 1.000000e+00 : f32
    %77 = vector.broadcast %cst_39 : f32 to vector<1x128xf32>
    %78 = arith.addf %77, %76 : vector<1x128xf32>
    %79 = arith.divf %77, %78 : vector<1x128xf32>
    %80 = arith.mulf %79, %41 : vector<1x128xf32>
    %81 = arith.addf %80, %44 : vector<1x128xf32>
    %82 = vector.extract_strided_slice %81 {offsets = [0, 0], sizes = [1, 32], strides = [1, 1]} : vector<1x128xf32> to vector<1x32xf32>
    %83 = vector.extract_strided_slice %81 {offsets = [0, 32], sizes = [1, 32], strides = [1, 1]} : vector<1x128xf32> to vector<1x32xf32>
    %84 = vector.extract_strided_slice %81 {offsets = [0, 64], sizes = [1, 32], strides = [1, 1]} : vector<1x128xf32> to vector<1x32xf32>
    %85 = vector.extract_strided_slice %81 {offsets = [0, 96], sizes = [1, 32], strides = [1, 1]} : vector<1x128xf32> to vector<1x32xf32>
    %86 = arith.mulf %83, %67 : vector<1x32xf32>
    %87 = arith.mulf %82, %84 : vector<1x32xf32>
    %88 = arith.addf %86, %87 : vector<1x32xf32>
    %89 = math.tanh %88 : vector<1x32xf32>
    %90 = arith.mulf %85, %89 : vector<1x32xf32>
    %91 = arith.truncf %90 : vector<1x32xf32> to vector<1x32xbf16>
    %cst_40 = arith.constant dense<0.000000e+00> : vector<1x128xf32>
    %92 = tpu.matmul %91, %32, %cst_40 {dimension_numbers = #tpu.dot_dimension_numbers<[1], [0], [0], [1], [0, 0, 1, 1], [], []>} : vector<1x32xbf16>, vector<32x128xbf16>, vector<1x128xf32> -> vector<1x128xf32>
    %93 = vector.extract_strided_slice %31 {offsets = [0, 2, 0], sizes = [1, 1, 128], strides = [1, 1, 1]} : vector<1x8x128xf32> to vector<1x1x128xf32>
    %94 = vector.shape_cast %93 : vector<1x1x128xf32> to vector<1x128xf32>
    %95 = arith.addf %92, %94 : vector<1x128xf32>
    %96 = arith.negf %95 : vector<1x128xf32>
    %97 = math.exp %96 : vector<1x128xf32>
    %cst_41 = arith.constant 1.000000e+00 : f32
    %98 = vector.broadcast %cst_41 : f32 to vector<1x128xf32>
    %99 = arith.addf %98, %97 : vector<1x128xf32>
    %100 = arith.divf %98, %99 : vector<1x128xf32>
    %101 = arith.mulf %100, %41 : vector<1x128xf32>
    %102 = arith.addf %101, %44 : vector<1x128xf32>
    %103 = vector.extract_strided_slice %102 {offsets = [0, 0], sizes = [1, 32], strides = [1, 1]} : vector<1x128xf32> to vector<1x32xf32>
    %104 = vector.extract_strided_slice %102 {offsets = [0, 32], sizes = [1, 32], strides = [1, 1]} : vector<1x128xf32> to vector<1x32xf32>
    %105 = vector.extract_strided_slice %102 {offsets = [0, 64], sizes = [1, 32], strides = [1, 1]} : vector<1x128xf32> to vector<1x32xf32>
    %106 = vector.extract_strided_slice %102 {offsets = [0, 96], sizes = [1, 32], strides = [1, 1]} : vector<1x128xf32> to vector<1x32xf32>
    %107 = arith.mulf %104, %88 : vector<1x32xf32>
    %108 = arith.mulf %103, %105 : vector<1x32xf32>
    %109 = arith.addf %107, %108 : vector<1x32xf32>
    %110 = math.tanh %109 : vector<1x32xf32>
    %111 = arith.mulf %106, %110 : vector<1x32xf32>
    %112 = arith.truncf %111 : vector<1x32xf32> to vector<1x32xbf16>
    %cst_42 = arith.constant dense<0.000000e+00> : vector<1x128xf32>
    %113 = tpu.matmul %112, %32, %cst_42 {dimension_numbers = #tpu.dot_dimension_numbers<[1], [0], [0], [1], [0, 0, 1, 1], [], []>} : vector<1x32xbf16>, vector<32x128xbf16>, vector<1x128xf32> -> vector<1x128xf32>
    %114 = vector.extract_strided_slice %31 {offsets = [0, 3, 0], sizes = [1, 1, 128], strides = [1, 1, 1]} : vector<1x8x128xf32> to vector<1x1x128xf32>
    %115 = vector.shape_cast %114 : vector<1x1x128xf32> to vector<1x128xf32>
    %116 = arith.addf %113, %115 : vector<1x128xf32>
    %117 = arith.negf %116 : vector<1x128xf32>
    %118 = math.exp %117 : vector<1x128xf32>
    %cst_43 = arith.constant 1.000000e+00 : f32
    %119 = vector.broadcast %cst_43 : f32 to vector<1x128xf32>
    %120 = arith.addf %119, %118 : vector<1x128xf32>
    %121 = arith.divf %119, %120 : vector<1x128xf32>
    %122 = arith.mulf %121, %41 : vector<1x128xf32>
    %123 = arith.addf %122, %44 : vector<1x128xf32>
    %124 = vector.extract_strided_slice %123 {offsets = [0, 0], sizes = [1, 32], strides = [1, 1]} : vector<1x128xf32> to vector<1x32xf32>
    %125 = vector.extract_strided_slice %123 {offsets = [0, 32], sizes = [1, 32], strides = [1, 1]} : vector<1x128xf32> to vector<1x32xf32>
    %126 = vector.extract_strided_slice %123 {offsets = [0, 64], sizes = [1, 32], strides = [1, 1]} : vector<1x128xf32> to vector<1x32xf32>
    %127 = vector.extract_strided_slice %123 {offsets = [0, 96], sizes = [1, 32], strides = [1, 1]} : vector<1x128xf32> to vector<1x32xf32>
    %128 = arith.mulf %125, %109 : vector<1x32xf32>
    %129 = arith.mulf %124, %126 : vector<1x32xf32>
    %130 = arith.addf %128, %129 : vector<1x32xf32>
    %131 = math.tanh %130 : vector<1x32xf32>
    %132 = arith.mulf %127, %131 : vector<1x32xf32>
    %133 = arith.truncf %132 : vector<1x32xf32> to vector<1x32xbf16>
    %cst_44 = arith.constant dense<0.000000e+00> : vector<1x128xf32>
    %134 = tpu.matmul %133, %32, %cst_44 {dimension_numbers = #tpu.dot_dimension_numbers<[1], [0], [0], [1], [0, 0, 1, 1], [], []>} : vector<1x32xbf16>, vector<32x128xbf16>, vector<1x128xf32> -> vector<1x128xf32>
    %135 = vector.extract_strided_slice %31 {offsets = [0, 4, 0], sizes = [1, 1, 128], strides = [1, 1, 1]} : vector<1x8x128xf32> to vector<1x1x128xf32>
    %136 = vector.shape_cast %135 : vector<1x1x128xf32> to vector<1x128xf32>
    %137 = arith.addf %134, %136 : vector<1x128xf32>
    %138 = arith.negf %137 : vector<1x128xf32>
    %139 = math.exp %138 : vector<1x128xf32>
    %cst_45 = arith.constant 1.000000e+00 : f32
    %140 = vector.broadcast %cst_45 : f32 to vector<1x128xf32>
    %141 = arith.addf %140, %139 : vector<1x128xf32>
    %142 = arith.divf %140, %141 : vector<1x128xf32>
    %143 = arith.mulf %142, %41 : vector<1x128xf32>
    %144 = arith.addf %143, %44 : vector<1x128xf32>
    %145 = vector.extract_strided_slice %144 {offsets = [0, 0], sizes = [1, 32], strides = [1, 1]} : vector<1x128xf32> to vector<1x32xf32>
    %146 = vector.extract_strided_slice %144 {offsets = [0, 32], sizes = [1, 32], strides = [1, 1]} : vector<1x128xf32> to vector<1x32xf32>
    %147 = vector.extract_strided_slice %144 {offsets = [0, 64], sizes = [1, 32], strides = [1, 1]} : vector<1x128xf32> to vector<1x32xf32>
    %148 = vector.extract_strided_slice %144 {offsets = [0, 96], sizes = [1, 32], strides = [1, 1]} : vector<1x128xf32> to vector<1x32xf32>
    %149 = arith.mulf %146, %130 : vector<1x32xf32>
    %150 = arith.mulf %145, %147 : vector<1x32xf32>
    %151 = arith.addf %149, %150 : vector<1x32xf32>
    %152 = math.tanh %151 : vector<1x32xf32>
    %153 = arith.mulf %148, %152 : vector<1x32xf32>
    %154 = arith.truncf %153 : vector<1x32xf32> to vector<1x32xbf16>
    %cst_46 = arith.constant dense<0.000000e+00> : vector<1x128xf32>
    %155 = tpu.matmul %154, %32, %cst_46 {dimension_numbers = #tpu.dot_dimension_numbers<[1], [0], [0], [1], [0, 0, 1, 1], [], []>} : vector<1x32xbf16>, vector<32x128xbf16>, vector<1x128xf32> -> vector<1x128xf32>
    %156 = vector.extract_strided_slice %31 {offsets = [0, 5, 0], sizes = [1, 1, 128], strides = [1, 1, 1]} : vector<1x8x128xf32> to vector<1x1x128xf32>
    %157 = vector.shape_cast %156 : vector<1x1x128xf32> to vector<1x128xf32>
    %158 = arith.addf %155, %157 : vector<1x128xf32>
    %159 = arith.negf %158 : vector<1x128xf32>
    %160 = math.exp %159 : vector<1x128xf32>
    %cst_47 = arith.constant 1.000000e+00 : f32
    %161 = vector.broadcast %cst_47 : f32 to vector<1x128xf32>
    %162 = arith.addf %161, %160 : vector<1x128xf32>
    %163 = arith.divf %161, %162 : vector<1x128xf32>
    %164 = arith.mulf %163, %41 : vector<1x128xf32>
    %165 = arith.addf %164, %44 : vector<1x128xf32>
    %166 = vector.extract_strided_slice %165 {offsets = [0, 0], sizes = [1, 32], strides = [1, 1]} : vector<1x128xf32> to vector<1x32xf32>
    %167 = vector.extract_strided_slice %165 {offsets = [0, 32], sizes = [1, 32], strides = [1, 1]} : vector<1x128xf32> to vector<1x32xf32>
    %168 = vector.extract_strided_slice %165 {offsets = [0, 64], sizes = [1, 32], strides = [1, 1]} : vector<1x128xf32> to vector<1x32xf32>
    %169 = vector.extract_strided_slice %165 {offsets = [0, 96], sizes = [1, 32], strides = [1, 1]} : vector<1x128xf32> to vector<1x32xf32>
    %170 = arith.mulf %167, %151 : vector<1x32xf32>
    %171 = arith.mulf %166, %168 : vector<1x32xf32>
    %172 = arith.addf %170, %171 : vector<1x32xf32>
    %173 = math.tanh %172 : vector<1x32xf32>
    %174 = arith.mulf %169, %173 : vector<1x32xf32>
    %175 = arith.truncf %174 : vector<1x32xf32> to vector<1x32xbf16>
    %cst_48 = arith.constant dense<0.000000e+00> : vector<1x128xf32>
    %176 = tpu.matmul %175, %32, %cst_48 {dimension_numbers = #tpu.dot_dimension_numbers<[1], [0], [0], [1], [0, 0, 1, 1], [], []>} : vector<1x32xbf16>, vector<32x128xbf16>, vector<1x128xf32> -> vector<1x128xf32>
    %177 = vector.extract_strided_slice %31 {offsets = [0, 6, 0], sizes = [1, 1, 128], strides = [1, 1, 1]} : vector<1x8x128xf32> to vector<1x1x128xf32>
    %178 = vector.shape_cast %177 : vector<1x1x128xf32> to vector<1x128xf32>
    %179 = arith.addf %176, %178 : vector<1x128xf32>
    %180 = arith.negf %179 : vector<1x128xf32>
    %181 = math.exp %180 : vector<1x128xf32>
    %cst_49 = arith.constant 1.000000e+00 : f32
    %182 = vector.broadcast %cst_49 : f32 to vector<1x128xf32>
    %183 = arith.addf %182, %181 : vector<1x128xf32>
    %184 = arith.divf %182, %183 : vector<1x128xf32>
    %185 = arith.mulf %184, %41 : vector<1x128xf32>
    %186 = arith.addf %185, %44 : vector<1x128xf32>
    %187 = vector.extract_strided_slice %186 {offsets = [0, 0], sizes = [1, 32], strides = [1, 1]} : vector<1x128xf32> to vector<1x32xf32>
    %188 = vector.extract_strided_slice %186 {offsets = [0, 32], sizes = [1, 32], strides = [1, 1]} : vector<1x128xf32> to vector<1x32xf32>
    %189 = vector.extract_strided_slice %186 {offsets = [0, 64], sizes = [1, 32], strides = [1, 1]} : vector<1x128xf32> to vector<1x32xf32>
    %190 = vector.extract_strided_slice %186 {offsets = [0, 96], sizes = [1, 32], strides = [1, 1]} : vector<1x128xf32> to vector<1x32xf32>
    %191 = arith.mulf %188, %172 : vector<1x32xf32>
    %192 = arith.mulf %187, %189 : vector<1x32xf32>
    %193 = arith.addf %191, %192 : vector<1x32xf32>
    %194 = math.tanh %193 : vector<1x32xf32>
    %195 = arith.mulf %190, %194 : vector<1x32xf32>
    %196 = arith.truncf %195 : vector<1x32xf32> to vector<1x32xbf16>
    %cst_50 = arith.constant dense<0.000000e+00> : vector<1x128xf32>
    %197 = tpu.matmul %196, %32, %cst_50 {dimension_numbers = #tpu.dot_dimension_numbers<[1], [0], [0], [1], [0, 0, 1, 1], [], []>} : vector<1x32xbf16>, vector<32x128xbf16>, vector<1x128xf32> -> vector<1x128xf32>
    %198 = vector.extract_strided_slice %31 {offsets = [0, 7, 0], sizes = [1, 1, 128], strides = [1, 1, 1]} : vector<1x8x128xf32> to vector<1x1x128xf32>
    %199 = vector.shape_cast %198 : vector<1x1x128xf32> to vector<1x128xf32>
    %200 = arith.addf %197, %199 : vector<1x128xf32>
    %201 = arith.negf %200 : vector<1x128xf32>
    %202 = math.exp %201 : vector<1x128xf32>
    %cst_51 = arith.constant 1.000000e+00 : f32
    %203 = vector.broadcast %cst_51 : f32 to vector<1x128xf32>
    %204 = arith.addf %203, %202 : vector<1x128xf32>
    %205 = arith.divf %203, %204 : vector<1x128xf32>
    %206 = arith.mulf %205, %41 : vector<1x128xf32>
    %207 = arith.addf %206, %44 : vector<1x128xf32>
    %208 = vector.extract_strided_slice %207 {offsets = [0, 0], sizes = [1, 32], strides = [1, 1]} : vector<1x128xf32> to vector<1x32xf32>
    %209 = vector.extract_strided_slice %207 {offsets = [0, 32], sizes = [1, 32], strides = [1, 1]} : vector<1x128xf32> to vector<1x32xf32>
    %210 = vector.extract_strided_slice %207 {offsets = [0, 64], sizes = [1, 32], strides = [1, 1]} : vector<1x128xf32> to vector<1x32xf32>
    %211 = vector.extract_strided_slice %207 {offsets = [0, 96], sizes = [1, 32], strides = [1, 1]} : vector<1x128xf32> to vector<1x32xf32>
    %212 = arith.mulf %209, %193 : vector<1x32xf32>
    %213 = arith.mulf %208, %210 : vector<1x32xf32>
    %214 = arith.addf %212, %213 : vector<1x32xf32>
    %215 = math.tanh %214 : vector<1x32xf32>
    %216 = arith.mulf %211, %215 : vector<1x32xf32>
    %217 = vector.shape_cast %216 : vector<1x32xf32> to vector<1x1x32xf32>
    %c0_52 = arith.constant 0 : index
    %c0_53 = arith.constant 0 : index
    %c0_54 = arith.constant 0 : index
    %218 = vector.load %arg17[%c0_52, %c0_53, %c0_54] : memref<1x1x32xf32, #tpu.memory_space<vmem>>, vector<1x1x32xf32>
    tpu.vector_store %arg17[%c0_52, %c0_53, %c0_54], %217 {strides = array<i32>} : memref<1x1x32xf32, #tpu.memory_space<vmem>>, vector<1x1x32xf32>,
    %219 = vector.shape_cast %214 : vector<1x32xf32> to vector<1x1x32xf32>
    %c0_55 = arith.constant 0 : index
    %c0_56 = arith.constant 0 : index
    %c0_57 = arith.constant 0 : index
    %220 = vector.load %arg18[%c0_55, %c0_56, %c0_57] : memref<1x1x32xf32, #tpu.memory_space<vmem>>, vector<1x1x32xf32>
    tpu.vector_store %arg18[%c0_55, %c0_56, %c0_57], %219 {strides = array<i32>} : memref<1x1x32xf32, #tpu.memory_space<vmem>>, vector<1x1x32xf32>,
    %221 = tpu.concatenate %69, %90, %111, %132, %153, %174, %195, %216 in 1 : vector<1x32xf32>, vector<1x32xf32>, vector<1x32xf32>, vector<1x32xf32>, vector<1x32xf32>, vector<1x32xf32>, vector<1x32xf32>, vector<1x32xf32> -> vector<1x256xf32>
    %222 = vector.shape_cast %221 : vector<1x256xf32> to vector<1x1x256xf32>
    %c0_58 = arith.constant 0 : index
    %c0_59 = arith.constant 0 : index
    %c0_60 = arith.constant 0 : index
    %223 = vector.load %arg15[%c0_58, %c0_59, %c0_60] : memref<1x1x256xf32, #tpu.memory_space<vmem>>, vector<1x1x256xf32>
    tpu.vector_store %arg15[%c0_58, %c0_59, %c0_60], %222 {strides = array<i32>} : memref<1x1x256xf32, #tpu.memory_space<vmem>>, vector<1x1x256xf32>,
    %c0_61 = arith.constant 0 : index
    %c0_62 = arith.constant 0 : index
    %224 = vector.load %arg13[%c0_61, %c0_62] : memref<256x8xf32, #tpu.memory_space<vmem>>, vector<256x8xf32>
    %cst_63 = arith.constant dense<0.000000e+00> : vector<1x8xf32>
    %225 = tpu.matmul %221, %224, %cst_63 {dimension_numbers = #tpu.dot_dimension_numbers<[1], [0], [0], [1], [0, 0, 1, 1], [], []>} : vector<1x256xf32>, vector<256x8xf32>, vector<1x8xf32> -> vector<1x8xf32>
    %c0_64 = arith.constant 0 : index
    %c0_65 = arith.constant 0 : index
    %226 = vector.load %arg14[%c0_64, %c0_65] : memref<1x8xf32, #tpu.memory_space<vmem>>, vector<1x8xf32>
    %227 = arith.addf %225, %226 : vector<1x8xf32>
    %228 = vector.shape_cast %227 : vector<1x8xf32> to vector<1x1x8xf32>
    %c0_66 = arith.constant 0 : index
    %c0_67 = arith.constant 0 : index
    %c0_68 = arith.constant 0 : index
    %229 = vector.load %arg16[%c0_66, %c0_67, %c0_68] : memref<1x1x8xf32, #tpu.memory_space<vmem>>, vector<1x1x8xf32>
    tpu.vector_store %arg16[%c0_66, %c0_67, %c0_68], %228 {strides = array<i32>} : memref<1x1x8xf32, #tpu.memory_space<vmem>>, vector<1x1x8xf32>,
    return
  }
  func.func @transform_0(%arg0: i32) -> (i32, i32, i32) {
    %c0_i32 = arith.constant 0 : i32
    %c0_i32_0 = arith.constant 0 : i32
    %c0_i32_1 = arith.constant 0 : i32
    return %arg0, %c0_i32, %c0_i32_0 : i32, i32, i32
  }
  func.func @transform_1(%arg0: i32) -> (i32, i32, i32) {
    %c0_i32 = arith.constant 0 : i32
    %c0_i32_0 = arith.constant 0 : i32
    %c0_i32_1 = arith.constant 0 : i32
    return %arg0, %c0_i32, %c0_i32_0 : i32, i32, i32
  }
  func.func @transform_2(%arg0: i32) -> (i32, i32, i32) {
    %c0_i32 = arith.constant 0 : i32
    %c0_i32_0 = arith.constant 0 : i32
    %c0_i32_1 = arith.constant 0 : i32
    return %arg0, %c0_i32, %c0_i32_0 : i32, i32, i32
  }
  func.func @transform_3(%arg0: i32) -> (i32, i32) {
    %c0_i32 = arith.constant 0 : i32
    %c0_i32_0 = arith.constant 0 : i32
    %c0_i32_1 = arith.constant 0 : i32
    return %c0_i32, %c0_i32_0 : i32, i32
  }
  func.func @transform_4(%arg0: i32) -> (i32, i32) {
    %c0_i32 = arith.constant 0 : i32
    %c0_i32_0 = arith.constant 0 : i32
    %c0_i32_1 = arith.constant 0 : i32
    return %c0_i32, %c0_i32_0 : i32, i32
  }
  func.func @transform_5(%arg0: i32) -> (i32, i32) {
    %c0_i32 = arith.constant 0 : i32
    %c0_i32_0 = arith.constant 0 : i32
    %c0_i32_1 = arith.constant 0 : i32
    return %c0_i32, %c0_i32_0 : i32, i32
  }
  func.func @transform_6(%arg0: i32) -> (i32, i32) {
    %c0_i32 = arith.constant 0 : i32
    %c0_i32_0 = arith.constant 0 : i32
    %c0_i32_1 = arith.constant 0 : i32
    return %c0_i32, %c0_i32_0 : i32, i32
  }
  func.func @transform_7(%arg0: i32) -> (i32, i32) {
    %c0_i32 = arith.constant 0 : i32
    %c0_i32_0 = arith.constant 0 : i32
    %c0_i32_1 = arith.constant 0 : i32
    return %c0_i32, %c0_i32_0 : i32, i32
  }
  func.func @transform_8(%arg0: i32) -> (i32, i32) {
    %c0_i32 = arith.constant 0 : i32
    %c0_i32_0 = arith.constant 0 : i32
    %c0_i32_1 = arith.constant 0 : i32
    return %c0_i32, %c0_i32_0 : i32, i32
  }
  func.func @transform_9(%arg0: i32) -> (i32, i32) {
    %c0_i32 = arith.constant 0 : i32
    %c0_i32_0 = arith.constant 0 : i32
    %c0_i32_1 = arith.constant 0 : i32
    return %c0_i32, %c0_i32_0 : i32, i32
  }
  func.func @transform_10(%arg0: i32) -> (i32, i32) {
    %c0_i32 = arith.constant 0 : i32
    %c0_i32_0 = arith.constant 0 : i32
    %c0_i32_1 = arith.constant 0 : i32
    return %c0_i32, %c0_i32_0 : i32, i32
  }
  func.func @transform_11(%arg0: i32) -> (i32, i32) {
    %c0_i32 = arith.constant 0 : i32
    %c0_i32_0 = arith.constant 0 : i32
    %c0_i32_1 = arith.constant 0 : i32
    return %c0_i32, %c0_i32_0 : i32, i32
  }
  func.func @transform_12(%arg0: i32) -> (i32, i32) {
    %c0_i32 = arith.constant 0 : i32
    %c0_i32_0 = arith.constant 0 : i32
    %c0_i32_1 = arith.constant 0 : i32
    return %c0_i32, %c0_i32_0 : i32, i32
  }
  func.func @transform_13(%arg0: i32) -> (i32, i32) {
    %c0_i32 = arith.constant 0 : i32
    %c0_i32_0 = arith.constant 0 : i32
    %c0_i32_1 = arith.constant 0 : i32
    return %c0_i32, %c0_i32_0 : i32, i32
  }
  func.func @transform_14(%arg0: i32) -> (i32, i32, i32) {
    %c0_i32 = arith.constant 0 : i32
    %c0_i32_0 = arith.constant 0 : i32
    %c0_i32_1 = arith.constant 0 : i32
    return %arg0, %c0_i32, %c0_i32_0 : i32, i32, i32
  }
  func.func @transform_15(%arg0: i32) -> (i32, i32, i32) {
    %c0_i32 = arith.constant 0 : i32
    %c0_i32_0 = arith.constant 0 : i32
    %c0_i32_1 = arith.constant 0 : i32
    return %arg0, %c0_i32, %c0_i32_0 : i32, i32, i32
  }
  func.func @transform_16(%arg0: i32) -> (i32, i32, i32) {
    %c0_i32 = arith.constant 0 : i32
    %c0_i32_0 = arith.constant 0 : i32
    %c0_i32_1 = arith.constant 0 : i32
    return %arg0, %c0_i32, %c0_i32_0 : i32, i32, i32
  }
  func.func @transform_17(%arg0: i32) -> (i32, i32, i32) {
    %c0_i32 = arith.constant 0 : i32
    %c0_i32_0 = arith.constant 0 : i32
    %c0_i32_1 = arith.constant 0 : i32
    return %arg0, %c0_i32, %c0_i32_0 : i32, i32, i32
  }
}

</mosaic_0001>

<bundles_post_ra>
// kernel: tpu_custom_call.1
= control target key start
LH: loop header
LB: loop body
LE: loop exit
PB: predicated region body
PF: predicated region fallthrough
CT: control target
= control target key end

     0   :  { %s7053_s0 = inlined_call_operand.vmem [shape: bf16[2,8,1024], index: 0, kind: input, shape index: {}]   ;;  %s7054_s1 = inlined_call_operand.vmem [shape: f32[2,1,32], index: 1, kind: input, shape index: {}]   ;;  %s7055_s2 = inlined_call_operand.vmem [shape: f32[2,1,32], index: 2, kind: input, shape index: {}]   ;;  %s7056_s3 = inlined_call_operand.vmem [shape: bf16[1024,392], index: 3, kind: input, shape index: {}]   ;;  %s7057_s4 = inlined_call_operand.vmem [shape: f32[1,392], index: 4, kind: input, shape index: {}]   ;;  %s7058_s5 = inlined_call_operand.vmem [shape: bf16[392,144], index: 5, kind: input, shape index: {}]   ;;  %s7059_s6 = inlined_call_operand.vmem [shape: f32[1,144], index: 6, kind: input, shape index: {}]   ;;  %s7060_s7 = inlined_call_operand.vmem [shape: bf16[144,32], index: 7, kind: input, shape index: {}]   ;;  %s7061_s8 = inlined_call_operand.vmem [shape: f32[1,32], index: 8, kind: input, shape index: {}]   ;;  %s7062_s9 = inlined_call_operand.vmem [shape: bf16[32,128], index: 9, kind: input, shape index: {}]   ;;  %s7063_s10 = inlined_call_operand.vmem [shape: f32[1,128], index: 10, kind: input, shape index: {}]   ;;  %s7064_s11 = inlined_call_operand.vmem [shape: bf16[32,128], index: 11, kind: input, shape index: {}]   ;;  %s7065_s12 = inlined_call_operand.vmem [shape: f32[256,8], index: 12, kind: input, shape index: {}]   ;;  %s7066_s13 = inlined_call_operand.vmem [shape: f32[1,8], index: 13, kind: input, shape index: {}]   ;;  %s7067_s14 = inlined_call_operand.hbm [shape: f32[2,1,256], index: 14, kind: output, shape index: {0}]   ;;  %s7068_s15 = inlined_call_operand.hbm [shape: f32[2,1,8], index: 15, kind: output, shape index: {1}]   ;;  %s7069_s16 = inlined_call_operand.hbm [shape: f32[2,1,32], index: 16, kind: output, shape index: {2}]   ;;  %s7070_s17 = inlined_call_operand.hbm [shape: f32[2,1,32], index: 17, kind: output, shape index: {3}]  }
   0x1   :  { %7081 = sst [smem:[#allocation18_spill]] %s7053_s0 }
   0x2   :  { %7082 = sst [smem:[#allocation19_spill]] %s7054_s1 }
   0x3   :  { %7083 = sst [smem:[#allocation20_spill]] %s7055_s2 }
   0x4   :  { %7084 = sst [smem:[#allocation21_spill]] %s7068_s15 }
   0x5   :  { %7085 = sst [smem:[#allocation22_spill]] %s7069_s16 }
   0x6   :  { %23 = vsyncpa [#allocation3], 0 }
   0x7   :  { %25 = vsyncpa [#allocation3 + $0x1], 0 }
   0x8   :  { %26 = vsyncpa [#allocation5], 0 }
   0x9   :  { %28 = vsyncpa [#allocation5 + $0x1], 0 }
   0xa   :  { %29 = vsyncpa [#allocation8], 0 }
   0xb   :  { %31 = vsyncpa [#allocation8 + $0x1], 0  ;;  %s5552_s24 = smov 0   ;;  %s5554_s25 = smov 0  }
   0xc   :  { %s5556_s26 = smov 0   ;;  %s5558_s27 = smov 0  }
   0xd LB: > { %7086 = sst [smem:[#allocation12_spill]] %s5436_s24  ;;  %s5573_s28 = sadd.s32 4294967295, %s5448_s27   ;;  %s5448_s27 = sphi %s5558_s27, %s7103_s27   ;;  %s5444_s26 = sphi %s5556_s26, %s7105_s26   ;;  %s5440_s25 = sphi %s5554_s25, %s7107_s25   ;;  %s5436_s24 = sphi %s5552_s24, %s7106_s24  }
   0xe   : > { %7087 = sst [smem:[#allocation13_spill]] %s5444_s26  ;;  %s7071_s29 = sadd.s32 4294967294, %s5448_s27  }
   0xf   : > { %7088 = sst [smem:[#allocation14_spill]] %s5448_s27  ;;  %s5577_s0 = sadd.s32 1, %s5448_s27  }
  0x10   : > { %7089 = sst [smem:[#allocation15_spill]] %s5577_s0  ;;  %s353_s30 = sadd.s32 1, %s5444_s26 }
  0x11   : > { %s350_s18 = ssub.s32 %s5448_s27, %s5577_s0  ;;  %p363_p0 = scmp.ne.s32.totalorder %s5444_s26, %s5440_s25 }
  0x12   : > { %p351_p1 = scmp.eq.s32.totalorder %s350_s18, 0  ;;  %p364_p2 = scmp.eq.s32.totalorder %s5573_s28, 1 }
  0x13   : > { %p369_p3 = scmp.ne.s32.totalorder %s5440_s25, %s5436_s24  ;;  %p370_p4 = scmp.eq.s32.totalorder %s7071_s29, 1 }
  0x14   : > { %s5590_s19 = scalar_select %p351_p1, %s5444_s26, %s353_s30  }
  0x15   : > { %p5592_p5 = por %p364_p2, %p363_p0  ;;  %p5596_p6 = por %p370_p4, %p369_p3 }
  0x16   : > { %7090 = sst [smem:[#allocation16_spill]] %s5590_s19  ;;  %p4141_p7 = scmp.ge.s32.totalorder %s5448_s27, 1 }
  0x17   : > { %s7092_s20 = scalar_select %p5596_p6, 1, 0 }
  0x18   : > { %p519_p8 = scmp.lt.s32.totalorder %s5448_s27, 3 }
  0x19   : > { %7093 = sst [smem:[#allocation17_spill]] %s7092_s20 }
  0x1a   : > { %p520_p9 = pnand %p4141_p7, %p519_p8 }
  0x1b   : > { %v4767_v0 = vld [vmem:[%s7056_s3 + $0x4] ss:$16 sps:$4 sm:$0xff] (!%p520_p9)   ;;  %v4769_v1 = vld [vmem:[%s7056_s3 + $0xc] ss:$16 sps:$4 sm:$0xff] (!%p520_p9)   ;;  %v4771_v2 = vld [vmem:[%s7056_s3] ss:$16 sps:$4 sm:$0xff] (!%p520_p9)  }
  0x1c   : > { %523 = sbr.rel (%p520_p9) target bundleno = 6904 (0x1af8), region = 76  ;;  %2191 = vmatprep.subr.bf16.mxu0 (!%p520_p9), %v4767_v0  ;;  %v4772_v3 = vld [vmem:[%s7056_s3 + $0x8] ss:$16 sps:$4 sm:$0xff] (!%p520_p9)   ;;  %2355 = vmatprep.subr.bf16.mxu1 (!%p520_p9), %v4769_v1  ;;  %v4773_v4 = vld [vmem:[%s7056_s3 + $0x24] ss:$16 sps:$4 sm:$0xff] (!%p520_p9)   ;;  %p589_p10 = scmp.lt.s32.totalorder (!%p520_p9), %s5573_s28, 1 }
  0x1d   : > { %2192 = vmatpush1.bf16.msra.mxu0 (!%p520_p9), %v4771_v2  ;;  %2356 = vmatpush1.bf16.msra.mxu1 (!%p520_p9), %v4772_v3  ;;  %v4775_v5 = vld [vmem:[%s7056_s3 + $0x2c] ss:$16 sps:$4 sm:$0xff] (!%p520_p9)   ;;  %v4777_v6 = vld [vmem:[%s7056_s3 + $0x20] ss:$16 sps:$4 sm:$0xff] (!%p520_p9)   ;;  %v4778_v7 = vld [vmem:[%s7056_s3 + $0x28] ss:$16 sps:$4 sm:$0xff] (!%p520_p9)  }
  0x1e   : > { %2193 = vmatprep.subr.bf16.mxu0 (!%p520_p9), %v4773_v4  ;;  %2357 = vmatprep.subr.bf16.mxu1 (!%p520_p9), %v4775_v5  ;;  %v4779_v8 = vld [vmem:[%s7056_s3 + $0x44] ss:$16 sps:$4 sm:$0xff] (!%p520_p9)   ;;  %v4781_v9 = vld [vmem:[%s7056_s3 + $0x4c] ss:$16 sps:$4 sm:$0xff] (!%p520_p9)   ;;  %v4783_v10 = vld [vmem:[%s7056_s3 + $0x40] ss:$16 sps:$4 sm:$0xff] (!%p520_p9)  }
  0x1f   : > { %v4784_v11 = vld [vmem:[%s7056_s3 + $0x48] ss:$16 sps:$4 sm:$0xff] (!%p520_p9)   ;;  %v4785_v12 = vld [vmem:[%s7056_s3 + $0x64] ss:$16 sps:$4 sm:$0xff] (!%p520_p9)   ;;  %v4787_v13 = vld [vmem:[%s7056_s3 + $0x6c] ss:$16 sps:$4 sm:$0xff] (!%p520_p9)  }
  0x20   : > { %v4789_v14 = vld [vmem:[%s7056_s3 + $0x60] ss:$16 sps:$4 sm:$0xff] (!%p520_p9)   ;;  %v4790_v15 = vld [vmem:[%s7056_s3 + $0x68] ss:$16 sps:$4 sm:$0xff] (!%p520_p9)   ;;  %v4791_v16 = vld [vmem:[%s7056_s3 + $0x84] ss:$16 sps:$4 sm:$0xff] (!%p520_p9)  }
  0x21   : > { %2194 = vmatpush1.bf16.msra.mxu0 (!%p520_p9), %v4777_v6  ;;  %2358 = vmatpush1.bf16.msra.mxu1 (!%p520_p9), %v4778_v7  ;;  %v4793_v17 = vld [vmem:[%s7056_s3 + $0x8c] ss:$16 sps:$4 sm:$0xff] (!%p520_p9)   ;;  %v4795_v18 = vld [vmem:[%s7056_s3 + $0x80] ss:$16 sps:$4 sm:$0xff] (!%p520_p9)   ;;  %v4796_v19 = vld [vmem:[%s7056_s3 + $0x88] ss:$16 sps:$4 sm:$0xff] (!%p520_p9)  }
  0x22   : > { %2195 = vmatprep.subr.bf16.mxu0 (!%p520_p9), %v4779_v8  ;;  %2359 = vmatprep.subr.bf16.mxu1 (!%p520_p9), %v4781_v9  ;;  %v4797_v20 = vld [vmem:[%s7056_s3 + $0xa4] ss:$16 sps:$4 sm:$0xff] (!%p520_p9)   ;;  %v4799_v21 = vld [vmem:[%s7056_s3 + $0xac] ss:$16 sps:$4 sm:$0xff] (!%p520_p9)   ;;  %v4801_v22 = vld [vmem:[%s7056_s3 + $0xa0] ss:$16 sps:$4 sm:$0xff] (!%p520_p9)  }
  0x23   : > { %v4802_v23 = vld [vmem:[%s7056_s3 + $0xa8] ss:$16 sps:$4 sm:$0xff]   ;;  %v4803_v24 = vld [vmem:[%s7056_s3 + $0xc4] ss:$16 sps:$4 sm:$0xff]   ;;  %v4805_v25 = vld [vmem:[%s7056_s3 + $0xcc] ss:$16 sps:$4 sm:$0xff]  }
  0x24   : > { %v4807_v26 = vld [vmem:[%s7056_s3 + $0xc0] ss:$16 sps:$4 sm:$0xff]   ;;  %v4808_v27 = vld [vmem:[%s7056_s3 + $0xc8] ss:$16 sps:$4 sm:$0xff]   ;;  %v4809_v28 = vld [vmem:[%s7056_s3 + $0xe4] ss:$16 sps:$4 sm:$0xff]  }
  0x25   : > { %2196 = vmatpush1.bf16.msra.mxu0 %v4783_v10  ;;  %2360 = vmatpush1.bf16.msra.mxu1 %v4784_v11  ;;  %v4811_v29 = vld [vmem:[%s7056_s3 + $0xec] ss:$16 sps:$4 sm:$0xff]   ;;  %v4813_v30 = vld [vmem:[%s7056_s3 + $0xe0] ss:$16 sps:$4 sm:$0xff]   ;;  %v4814_v31 = vld [vmem:[%s7056_s3 + $0xe8] ss:$16 sps:$4 sm:$0xff]  }
  0x26   : > { %2197 = vmatprep.subr.bf16.mxu0 %v4785_v12  ;;  %2361 = vmatprep.subr.bf16.mxu1 %v4787_v13  ;;  %v4815_v32 = vld [vmem:[%s7056_s3 + $0x104] ss:$16 sps:$4 sm:$0xff]   ;;  %v4817_v33 = vld [vmem:[%s7056_s3 + $0x10c] ss:$16 sps:$4 sm:$0xff]   ;;  %v4819_v34 = vld [vmem:[%s7056_s3 + $0x100] ss:$16 sps:$4 sm:$0xff]  }
  0x27   : > { %v4820_v35 = vld [vmem:[%s7056_s3 + $0x108] ss:$16 sps:$4 sm:$0xff]   ;;  %v4821_v36 = vld [vmem:[%s7056_s3 + $0x124] ss:$16 sps:$4 sm:$0xff]   ;;  %s5715_s29 = scalar_select %p589_p10, %s5573_s28, 1  ;;  %vm2833_vm0 = vcmask 64512  }
  0x28   : > { %v4823_v37 = vld [vmem:[%s7056_s3 + $0x12c] ss:$16 sps:$4 sm:$0xff]   ;;  %v4825_v38 = vld [vmem:[%s7056_s3 + $0x120] ss:$16 sps:$4 sm:$0xff]   ;;  %v4826_v39 = vld [vmem:[%s7056_s3 + $0x128] ss:$16 sps:$4 sm:$0xff]  }
  0x29   : > { %2198 = vmatpush1.bf16.msra.mxu0 %v4789_v14  ;;  %2362 = vmatpush1.bf16.msra.mxu1 %v4790_v15  ;;  %v4827_v40 = vld [vmem:[%s7056_s3 + $0x144] ss:$16 sps:$4 sm:$0xff]   ;;  %s4503_s18 = sshll.u32 %s5715_s29, 5  ;;  %v4829_v41 = vld [vmem:[%s7056_s3 + $0x14c] ss:$16 sps:$4 sm:$0xff]   ;;  %s7094_s16 = sld [smem:[#allocation18_spill]] }
  0x2a   : > { %2199 = vmatprep.subr.bf16.mxu0 %v4791_v16  ;;  %2363 = vmatprep.subr.bf16.mxu1 %v4793_v17  ;;  %v4831_v42 = vld [vmem:[%s7056_s3 + $0x140] ss:$16 sps:$4 sm:$0xff]   ;;  %v4832_v43 = vld [vmem:[%s7056_s3 + $0x148] ss:$16 sps:$4 sm:$0xff]   ;;  %v4833_v44 = vld [vmem:[%s7056_s3 + $0x164] ss:$16 sps:$4 sm:$0xff]  }
  0x2b   : > { %v4835_v45 = vld [vmem:[%s7056_s3 + $0x16c] ss:$16 sps:$4 sm:$0xff]   ;;  %v4837_v47 = vld [vmem:[%s7056_s3 + $0x160] ss:$16 sps:$4 sm:$0xff]   ;;  %v4838_v49 = vld [vmem:[%s7056_s3 + $0x168] ss:$16 sps:$4 sm:$0xff]  }
  0x2c   : > { %v4839_v50 = vld [vmem:[%s7056_s3 + $0x184] ss:$16 sps:$4 sm:$0xff]   ;;  %v4841_v51 = vld [vmem:[%s7056_s3 + $0x18c] ss:$16 sps:$4 sm:$0xff]   ;;  %v4843_v52 = vld [vmem:[%s7056_s3 + $0x180] ss:$16 sps:$4 sm:$0xff]  }
  0x2d   : > { %2200 = vmatpush1.bf16.msra.mxu0 %v4795_v18  ;;  %2364 = vmatpush1.bf16.msra.mxu1 %v4796_v19  ;;  %v4844_v53 = vld [vmem:[%s7056_s3 + $0x188] ss:$16 sps:$4 sm:$0xff]   ;;  %v4845_v54 = vld [vmem:[%s7056_s3 + $0x1a4] ss:$16 sps:$4 sm:$0xff]   ;;  %v4847_v55 = vld [vmem:[%s7056_s3 + $0x1ac] ss:$16 sps:$4 sm:$0xff]  }
  0x2e   : > { %2201 = vmatprep.subr.bf16.mxu0 %v4797_v20  ;;  %2365 = vmatprep.subr.bf16.mxu1 %v4799_v21  ;;  %v4849_v56 = vld [vmem:[%s7056_s3 + $0x1a0] ss:$16 sps:$4 sm:$0xff]   ;;  %v4850_v57 = vld [vmem:[%s7056_s3 + $0x1a8] ss:$16 sps:$4 sm:$0xff]   ;;  %v4851_v58 = vld [vmem:[%s7056_s3 + $0x1c4] ss:$16 sps:$4 sm:$0xff]  }
  0x2f   : > { %s5742_s22 = scalar_lea.vmem %s7094_s16, %s4503_s18  ;;  %v4853_v59 = vld [vmem:[%s7056_s3 + $0x1cc] ss:$16 sps:$4 sm:$0xff]   ;;  %v4855_v60 = vld [vmem:[%s7056_s3 + $0x1c0] ss:$16 sps:$4 sm:$0xff]   ;;  %v4856_v61 = vld [vmem:[%s7056_s3 + $0x1c8] ss:$16 sps:$4 sm:$0xff]  }
  0x30   : > { %v601_v46 = vld [vmem:[%s5742_s22] sm:$0xff]  ;;  %v4859_v63 = vld [vmem:[%s7056_s3 + $0x1ec] ss:$16 sps:$4 sm:$0xff]   ;;  %v4862_v1 = vld [vmem:[%s7056_s3 + $0x1e8] ss:$16 sps:$4 sm:$0xff]   ;;  %vm2837_vm1 = vcmask 1043456  }
  0x31   : > { %2202 = vmatpush1.bf16.msra.mxu0 %v4801_v22  ;;  %2366 = vmatpush1.bf16.msra.mxu1 %v4802_v23  ;;  %v4146_v48 = vcombine.high %v601_v46, %v601_v46  ;;  %v4857_v62 = vld [vmem:[%s7056_s3 + $0x1e4] ss:$16 sps:$4 sm:$0xff]   ;;  %v4861_v0 = vld [vmem:[%s7056_s3 + $0x1e0] ss:$16 sps:$4 sm:$0xff]   ;;  %v4870_v3 = vld [vmem:[%s7056_s3 + $0x20c] ss:$16 sps:$4 sm:$0xff]   ;;  %v4145_v4 = vcombine.low %v601_v46, %v601_v46 }
  0x32   : > { %2203 = vmatprep.subr.bf16.mxu0 %v4803_v24  ;;  %2367 = vmatprep.subr.bf16.mxu1 %v4805_v25  ;;  %v4867_v2 = vld [vmem:[%s7056_s3 + $0x204] ss:$16 sps:$4 sm:$0xff]   ;;  %v4865_v5 = vld [vmem:[%s7056_s3 + $0x200] ss:$16 sps:$4 sm:$0xff]   ;;  %v4868_v6 = vld [vmem:[%s7056_s3 + $0x208] ss:$16 sps:$4 sm:$0xff]  }
  0x33   : > { %2223 = vmatprep.mubr.bf16.mxu0 %v4146_v48  ;;  %2387 = vmatprep.mubr.bf16.mxu1 %v4146_v48  ;;  %v4873_v7 = vld [vmem:[%s7056_s3 + $0x224] ss:$16 sps:$4 sm:$0xff]   ;;  %v4876_v8 = vld [vmem:[%s7056_s3 + $0x22c] ss:$16 sps:$4 sm:$0xff]   ;;  %v4871_v9 = vld [vmem:[%s7056_s3 + $0x220] ss:$16 sps:$4 sm:$0xff]  }
  0x34   : > { %v4874_v10 = vld [vmem:[%s7056_s3 + $0x228] ss:$16 sps:$4 sm:$0xff]   ;;  %v4879_v11 = vld [vmem:[%s7056_s3 + $0x244] ss:$16 sps:$4 sm:$0xff]   ;;  %v4882_v12 = vld [vmem:[%s7056_s3 + $0x24c] ss:$16 sps:$4 sm:$0xff]  }
  0x35   : > { %2204 = vmatpush1.bf16.msra.mxu0 %v4807_v26  ;;  %2368 = vmatpush1.bf16.msra.mxu1 %v4808_v27  ;;  %v4877_v13 = vld [vmem:[%s7056_s3 + $0x240] ss:$16 sps:$4 sm:$0xff]   ;;  %v4880_v14 = vld [vmem:[%s7056_s3 + $0x248] ss:$16 sps:$4 sm:$0xff]   ;;  %v4885_v15 = vld [vmem:[%s7056_s3 + $0x264] ss:$16 sps:$4 sm:$0xff]  }
  0x36   : > { %2205 = vmatprep.subr.bf16.mxu0 %v4809_v28  ;;  %2369 = vmatprep.subr.bf16.mxu1 %v4811_v29  ;;  %v4888_v16 = vld [vmem:[%s7056_s3 + $0x26c] ss:$16 sps:$4 sm:$0xff]   ;;  %v4883_v17 = vld [vmem:[%s7056_s3 + $0x260] ss:$16 sps:$4 sm:$0xff]   ;;  %v4886_v18 = vld [vmem:[%s7056_s3 + $0x268] ss:$16 sps:$4 sm:$0xff]  }
  0x37   : > { %v4891_v19 = vld [vmem:[%s7056_s3 + $0x284] ss:$16 sps:$4 sm:$0xff]   ;;  %v4894_v20 = vld [vmem:[%s7056_s3 + $0x28c] ss:$16 sps:$4 sm:$0xff]   ;;  %v4889_v21 = vld [vmem:[%s7056_s3 + $0x280] ss:$16 sps:$4 sm:$0xff]  }
  0x38   : > { %v4892_v22 = vld [vmem:[%s7056_s3 + $0x288] ss:$16 sps:$4 sm:$0xff]   ;;  %v4897_v23 = vld [vmem:[%s7056_s3 + $0x2a4] ss:$16 sps:$4 sm:$0xff]   ;;  %v4900_v24 = vld [vmem:[%s7056_s3 + $0x2ac] ss:$16 sps:$4 sm:$0xff]  }
  0x39   : > { %2206 = vmatpush1.bf16.msra.mxu0 %v4813_v30  ;;  %2370 = vmatpush1.bf16.msra.mxu1 %v4814_v31  ;;  %v4895_v25 = vld [vmem:[%s7056_s3 + $0x2a0] ss:$16 sps:$4 sm:$0xff]   ;;  %v4898_v26 = vld [vmem:[%s7056_s3 + $0x2a8] ss:$16 sps:$4 sm:$0xff]   ;;  %v4903_v27 = vld [vmem:[%s7056_s3 + $0x2c4] ss:$16 sps:$4 sm:$0xff]  }
  0x3a   : > { %2207 = vmatprep.subr.bf16.mxu0 %v4815_v32  ;;  %2371 = vmatprep.subr.bf16.mxu1 %v4817_v33  ;;  %v4906_v28 = vld [vmem:[%s7056_s3 + $0x2cc] ss:$16 sps:$4 sm:$0xff]   ;;  %v4901_v31 = vld [vmem:[%s7056_s3 + $0x2c0] ss:$16 sps:$4 sm:$0xff]   ;;  %v4904_v32 = vld [vmem:[%s7056_s3 + $0x2c8] ss:$16 sps:$4 sm:$0xff]  }
  0x3b   : > { %v5884_v29 = vld [vmem:[%s5742_s22 + $0x8] sm:$0xff]  ;;  %v4909_v33 = vld [vmem:[%s7056_s3 + $0x2e4] ss:$16 sps:$4 sm:$0xff]   ;;  %vm3009_vm2 = vcmask 130048   ;;  %s7095_s18 = sld [smem:[#allocation19_spill]]  ;;  %vm5452_vm3 = vmmov 0  }
  0x3c   : > { %v4148_v30 = vcombine.high %v5884_v29, %v5884_v29  ;;  %v4930_v46 = vld [vmem:[%s7056_s3 + $0x34c] ss:$16 sps:$4 sm:$0xff]   ;;  %v4928_v48 = vld [vmem:[%s7056_s3 + $0x348] ss:$16 sps:$4 sm:$0xff]   ;;  %vm3078_vm4 = vcmask 261120   ;;  %s7096_s2 = sld [smem:[#allocation20_spill]] }
  0x3d   : > { %2208 = vmatpush1.bf16.msra.mxu0 %v4819_v34  ;;  %2372 = vmatpush1.bf16.msra.mxu1 %v4820_v35  ;;  %v4912_v34 = vld [vmem:[%s7056_s3 + $0x2ec] ss:$16 sps:$4 sm:$0xff]   ;;  %v4907_v35 = vld [vmem:[%s7056_s3 + $0x2e0] ss:$16 sps:$4 sm:$0xff]   ;;  %s5454_s30 = smov 64   ;;  %s5455_s27 = smov 32  }
  0x3e   : > { %2209 = vmatprep.subr.bf16.mxu0 %v4821_v36  ;;  %2373 = vmatprep.subr.bf16.mxu1 %v4823_v37  ;;  %v4910_v36 = vld [vmem:[%s7056_s3 + $0x2e8] ss:$16 sps:$4 sm:$0xff]   ;;  %v4915_v37 = vld [vmem:[%s7056_s3 + $0x304] ss:$16 sps:$4 sm:$0xff]   ;;  %s5456_s20 = smov 96   ;;  %vm3779_vm8 = vcmask 523264  }
  0x3f   : > { %vm3781_vm9 = vcmask 785408   ;;  %vm3747_vm10 = vcmask 253952   ;;  %s6913_s23 = sshll.u32 %s5573_s28, 4 }
  0x41   : > { %2210 = vmatpush1.bf16.msra.mxu0 %v4825_v38  ;;  %2374 = vmatpush1.bf16.msra.mxu1 %v4826_v39  ;;  %v4918_v38 = vld [vmem:[%s7056_s3 + $0x30c] ss:$16 sps:$4 sm:$0xff]   ;;  %v4913_v39 = vld [vmem:[%s7056_s3 + $0x300] ss:$16 sps:$4 sm:$0xff]   ;;  %s596_s15 = scalar_lea.vmem %s7095_s18, %s5715_s29 }
  0x42   : > { %2211 = vmatprep.subr.bf16.mxu0 %v4827_v40  ;;  %2375 = vmatprep.subr.bf16.mxu1 %v4829_v41  ;;  %v4916_v40 = vld [vmem:[%s7056_s3 + $0x308] ss:$16 sps:$4 sm:$0xff]   ;;  %v4921_v41 = vld [vmem:[%s7056_s3 + $0x324] ss:$16 sps:$4 sm:$0xff]   ;;  %s599_s24 = scalar_lea.vmem %s7096_s2, %s5715_s29 }
  0x45   : > { %2212 = vmatpush1.bf16.msra.mxu0 %v4831_v42  ;;  %2376 = vmatpush1.bf16.msra.mxu1 %v4832_v43  ;;  %v4924_v42 = vld [vmem:[%s7056_s3 + $0x32c] ss:$16 sps:$4 sm:$0xff]   ;;  %v4919_v43 = vld [vmem:[%s7056_s3 + $0x320] ss:$16 sps:$4 sm:$0xff]  }
  0x46   : > { %2213 = vmatprep.subr.bf16.mxu0 %v4833_v44  ;;  %2377 = vmatprep.subr.bf16.mxu1 %v4835_v45  ;;  %v4922_v44 = vld [vmem:[%s7056_s3 + $0x328] ss:$16 sps:$4 sm:$0xff]   ;;  %v4927_v45 = vld [vmem:[%s7056_s3 + $0x344] ss:$16 sps:$4 sm:$0xff]  }
  0x49   : > { %2214 = vmatpush1.bf16.msra.mxu0 %v4837_v47  ;;  %2378 = vmatpush1.bf16.msra.mxu1 %v4838_v49  ;;  %v4925_v47 = vld [vmem:[%s7056_s3 + $0x340] ss:$16 sps:$4 sm:$0xff]   ;;  %v4933_v49 = vld [vmem:[%s7056_s3 + $0x364] ss:$16 sps:$4 sm:$0xff]  }
  0x4a   : > { %2215 = vmatprep.subr.bf16.mxu0 %v4839_v50  ;;  %2379 = vmatprep.subr.bf16.mxu1 %v4841_v51  ;;  %v4936_v50 = vld [vmem:[%s7056_s3 + $0x36c] ss:$16 sps:$4 sm:$0xff]   ;;  %v4931_v51 = vld [vmem:[%s7056_s3 + $0x360] ss:$16 sps:$4 sm:$0xff]  }
  0x4d   : > { %2216 = vmatpush1.bf16.msra.mxu0 %v4843_v52  ;;  %2380 = vmatpush1.bf16.msra.mxu1 %v4844_v53  ;;  %v4934_v52 = vld [vmem:[%s7056_s3 + $0x368] ss:$16 sps:$4 sm:$0xff]   ;;  %v4939_v53 = vld [vmem:[%s7056_s3 + $0x384] ss:$16 sps:$4 sm:$0xff]  }
  0x4e   : > { %2217 = vmatprep.subr.bf16.mxu0 %v4845_v54  ;;  %2381 = vmatprep.subr.bf16.mxu1 %v4847_v55  ;;  %v4942_v54 = vld [vmem:[%s7056_s3 + $0x38c] ss:$16 sps:$4 sm:$0xff]   ;;  %v4937_v55 = vld [vmem:[%s7056_s3 + $0x380] ss:$16 sps:$4 sm:$0xff]  }
  0x51   : > { %2218 = vmatpush1.bf16.msra.mxu0 %v4849_v56  ;;  %2382 = vmatpush1.bf16.msra.mxu1 %v4850_v57  ;;  %v4940_v56 = vld [vmem:[%s7056_s3 + $0x388] ss:$16 sps:$4 sm:$0xff]   ;;  %v4945_v57 = vld [vmem:[%s7056_s3 + $0x3a4] ss:$16 sps:$4 sm:$0xff]  }
  0x52   : > { %2219 = vmatprep.subr.bf16.mxu0 %v4851_v58  ;;  %2383 = vmatprep.subr.bf16.mxu1 %v4853_v59  ;;  %v4948_v58 = vld [vmem:[%s7056_s3 + $0x3ac] ss:$16 sps:$4 sm:$0xff]   ;;  %v4943_v59 = vld [vmem:[%s7056_s3 + $0x3a0] ss:$16 sps:$4 sm:$0xff]  }
  0x55   : > { %2220 = vmatpush1.bf16.msra.mxu0 %v4855_v60  ;;  %2384 = vmatpush1.bf16.msra.mxu1 %v4856_v61  ;;  %v4946_v60 = vld [vmem:[%s7056_s3 + $0x3a8] ss:$16 sps:$4 sm:$0xff]   ;;  %v4951_v61 = vld [vmem:[%s7056_s3 + $0x3c4] ss:$16 sps:$4 sm:$0xff]  }
  0x56   : > { %2221 = vmatprep.subr.bf16.mxu0 %v4857_v62  ;;  %2385 = vmatprep.subr.bf16.mxu1 %v4859_v63  ;;  %v4954_v62 = vld [vmem:[%s7056_s3 + $0x3cc] ss:$16 sps:$4 sm:$0xff]   ;;  %v4949_v63 = vld [vmem:[%s7056_s3 + $0x3c0] ss:$16 sps:$4 sm:$0xff]  }
  0x59   : > { %2222 = vmatpush1.bf16.msra.mxu0 %v4861_v0  ;;  %2386 = vmatpush1.bf16.msra.mxu1 %v4862_v1  ;;  %v4952_v0 = vld [vmem:[%s7056_s3 + $0x3c8] ss:$16 sps:$4 sm:$0xff]   ;;  %v4957_v1 = vld [vmem:[%s7056_s3 + $0x3e4] ss:$16 sps:$4 sm:$0xff]  }
  0x5a   : > { %2232 = vmatprep.subr.bf16.mxu0 %v4867_v2  ;;  %2396 = vmatprep.subr.bf16.mxu1 %v4870_v3  ;;  %v4960_v2 = vld [vmem:[%s7056_s3 + $0x3ec] ss:$16 sps:$4 sm:$0xff]   ;;  %v4955_v3 = vld [vmem:[%s7056_s3 + $0x3e0] ss:$16 sps:$4 sm:$0xff]  }
  0x5c   : > { %2224 = vmatmul.mubr.bf16.vlgmr.msra.gmra.mrb[0].mxu0 %v4145_v4  ;;  %2388 = vmatmul.mubr.bf16.vlgmr.msra.gmra.mrb[0].mxu1 %v4145_v4  ;;  %v4958_v4 = vld [vmem:[%s7056_s3 + $0x3e8] ss:$16 sps:$4 sm:$0xff]  }
  0x5d   : > { %2233 = vmatpush1.bf16.msra.mxu0 %v4865_v5  ;;  %2397 = vmatpush1.bf16.msra.mxu1 %v4868_v6  ;;  %v4965_v5 = vld [vmem:[%s7056_s3 + $0x404] ss:$16 sps:$4 sm:$0xff]   ;;  %v4968_v6 = vld [vmem:[%s7056_s3 + $0x40c] ss:$16 sps:$4 sm:$0xff]  }
  0x5e   : > { %2234 = vmatprep.subr.bf16.mxu0 %v4873_v7  ;;  %2398 = vmatprep.subr.bf16.mxu1 %v4876_v8  ;;  %v4147_v7 = vcombine.low %v5884_v29, %v5884_v29  ;;  %v4963_v8 = vld [vmem:[%s7056_s3 + $0x400] ss:$16 sps:$4 sm:$0xff]   ;;  %v4998_v29 = vld [vmem:[%s7056_s3 + $0x4ac] ss:$16 sps:$4 sm:$0xff]  }
  0x5f   : > { %2264 = vmatprep.mubr.bf16.mxu0 %v4148_v30  ;;  %2428 = vmatprep.mubr.bf16.mxu1 %v4148_v30  ;;  %v4993_v30 = vld [vmem:[%s7056_s3 + $0x4a0] ss:$16 sps:$4 sm:$0xff]  }
  0x61   : > { %2235 = vmatpush1.bf16.msra.mxu0 %v4871_v9  ;;  %2399 = vmatpush1.bf16.msra.mxu1 %v4874_v10  ;;  %v4966_v9 = vld [vmem:[%s7056_s3 + $0x408] ss:$16 sps:$4 sm:$0xff]   ;;  %v4971_v10 = vld [vmem:[%s7056_s3 + $0x424] ss:$16 sps:$4 sm:$0xff]  }
  0x62   : > { %2236 = vmatprep.subr.bf16.mxu0 %v4879_v11  ;;  %2400 = vmatprep.subr.bf16.mxu1 %v4882_v12  ;;  %v6020_v11 = vld [vmem:[%s5742_s22 + $0x10] sm:$0xff]  ;;  %v4974_v12 = vld [vmem:[%s7056_s3 + $0x42c] ss:$16 sps:$4 sm:$0xff]  }
  0x65   : > { %2237 = vmatpush1.bf16.msra.mxu0 %v4877_v13  ;;  %2401 = vmatpush1.bf16.msra.mxu1 %v4880_v14  ;;  %v4150_v13 = vcombine.high %v6020_v11, %v6020_v11  ;;  %v4969_v14 = vld [vmem:[%s7056_s3 + $0x420] ss:$16 sps:$4 sm:$0xff]  }
  0x66   : > { %2238 = vmatprep.subr.bf16.mxu0 %v4885_v15  ;;  %2402 = vmatprep.subr.bf16.mxu1 %v4888_v16  ;;  %v4972_v15 = vld [vmem:[%s7056_s3 + $0x428] ss:$16 sps:$4 sm:$0xff]   ;;  %v4977_v16 = vld [vmem:[%s7056_s3 + $0x444] ss:$16 sps:$4 sm:$0xff]  }
  0x69   : > { %2239 = vmatpush1.bf16.msra.mxu0 %v4883_v17  ;;  %2403 = vmatpush1.bf16.msra.mxu1 %v4886_v18  ;;  %v4980_v17 = vld [vmem:[%s7056_s3 + $0x44c] ss:$16 sps:$4 sm:$0xff]   ;;  %v4975_v18 = vld [vmem:[%s7056_s3 + $0x440] ss:$16 sps:$4 sm:$0xff]  }
  0x6a   : > { %2240 = vmatprep.subr.bf16.mxu0 %v4891_v19  ;;  %2404 = vmatprep.subr.bf16.mxu1 %v4894_v20  ;;  %v4978_v19 = vld [vmem:[%s7056_s3 + $0x448] ss:$16 sps:$4 sm:$0xff]   ;;  %v4983_v20 = vld [vmem:[%s7056_s3 + $0x464] ss:$16 sps:$4 sm:$0xff]  }
  0x6d   : > { %2241 = vmatpush1.bf16.msra.mxu0 %v4889_v21  ;;  %2405 = vmatpush1.bf16.msra.mxu1 %v4892_v22  ;;  %v4986_v21 = vld [vmem:[%s7056_s3 + $0x46c] ss:$16 sps:$4 sm:$0xff]   ;;  %v4981_v22 = vld [vmem:[%s7056_s3 + $0x460] ss:$16 sps:$4 sm:$0xff]  }
  0x6e   : > { %2242 = vmatprep.subr.bf16.mxu0 %v4897_v23  ;;  %2406 = vmatprep.subr.bf16.mxu1 %v4900_v24  ;;  %v4984_v23 = vld [vmem:[%s7056_s3 + $0x468] ss:$16 sps:$4 sm:$0xff]   ;;  %v4989_v24 = vld [vmem:[%s7056_s3 + $0x484] ss:$16 sps:$4 sm:$0xff]  }
  0x71   : > { %2243 = vmatpush1.bf16.msra.mxu0 %v4895_v25  ;;  %2407 = vmatpush1.bf16.msra.mxu1 %v4898_v26  ;;  %v4992_v25 = vld [vmem:[%s7056_s3 + $0x48c] ss:$16 sps:$4 sm:$0xff]   ;;  %v4987_v26 = vld [vmem:[%s7056_s3 + $0x480] ss:$16 sps:$4 sm:$0xff]  }
  0x72   : > { %2244 = vmatprep.subr.bf16.mxu0 %v4903_v27  ;;  %2408 = vmatprep.subr.bf16.mxu1 %v4906_v28  ;;  %v4990_v27 = vld [vmem:[%s7056_s3 + $0x488] ss:$16 sps:$4 sm:$0xff]   ;;  %v4995_v28 = vld [vmem:[%s7056_s3 + $0x4a4] ss:$16 sps:$4 sm:$0xff]  }
  0x75   : > { %2245 = vmatpush1.bf16.msra.mxu0 %v4901_v31  ;;  %2409 = vmatpush1.bf16.msra.mxu1 %v4904_v32  ;;  %v4996_v31 = vld [vmem:[%s7056_s3 + $0x4a8] ss:$16 sps:$4 sm:$0xff]   ;;  %v5001_v32 = vld [vmem:[%s7056_s3 + $0x4c4] ss:$16 sps:$4 sm:$0xff]  }
  0x76   : > { %2246 = vmatprep.subr.bf16.mxu0 %v4909_v33  ;;  %2410 = vmatprep.subr.bf16.mxu1 %v4912_v34  ;;  %v5004_v33 = vld [vmem:[%s7056_s3 + $0x4cc] ss:$16 sps:$4 sm:$0xff]   ;;  %v4999_v34 = vld [vmem:[%s7056_s3 + $0x4c0] ss:$16 sps:$4 sm:$0xff]  }
  0x79   : > { %2247 = vmatpush1.bf16.msra.mxu0 %v4907_v35  ;;  %2411 = vmatpush1.bf16.msra.mxu1 %v4910_v36  ;;  %v5002_v35 = vld [vmem:[%s7056_s3 + $0x4c8] ss:$16 sps:$4 sm:$0xff]   ;;  %v5007_v36 = vld [vmem:[%s7056_s3 + $0x4e4] ss:$16 sps:$4 sm:$0xff]  }
  0x7a   : > { %2248 = vmatprep.subr.bf16.mxu0 %v4915_v37  ;;  %2412 = vmatprep.subr.bf16.mxu1 %v4918_v38  ;;  %v5010_v37 = vld [vmem:[%s7056_s3 + $0x4ec] ss:$16 sps:$4 sm:$0xff]   ;;  %v5005_v38 = vld [vmem:[%s7056_s3 + $0x4e0] ss:$16 sps:$4 sm:$0xff]  }
  0x7d   : > { %2249 = vmatpush1.bf16.msra.mxu0 %v4913_v39  ;;  %2413 = vmatpush1.bf16.msra.mxu1 %v4916_v40  ;;  %v5008_v39 = vld [vmem:[%s7056_s3 + $0x4e8] ss:$16 sps:$4 sm:$0xff]   ;;  %v5013_v40 = vld [vmem:[%s7056_s3 + $0x504] ss:$16 sps:$4 sm:$0xff]  }
  0x7e   : > { %2250 = vmatprep.subr.bf16.mxu0 %v4921_v41  ;;  %2414 = vmatprep.subr.bf16.mxu1 %v4924_v42  ;;  %v5016_v41 = vld [vmem:[%s7056_s3 + $0x50c] ss:$16 sps:$4 sm:$0xff]   ;;  %v5011_v42 = vld [vmem:[%s7056_s3 + $0x500] ss:$16 sps:$4 sm:$0xff]  }
  0x81   : > { %2251 = vmatpush1.bf16.msra.mxu0 %v4919_v43  ;;  %2415 = vmatpush1.bf16.msra.mxu1 %v4922_v44  ;;  %v5014_v43 = vld [vmem:[%s7056_s3 + $0x508] ss:$16 sps:$4 sm:$0xff]   ;;  %v5019_v44 = vld [vmem:[%s7056_s3 + $0x524] ss:$16 sps:$4 sm:$0xff]  }
  0x82   : > { %2252 = vmatprep.subr.bf16.mxu0 %v4927_v45  ;;  %2416 = vmatprep.subr.bf16.mxu1 %v4930_v46  ;;  %v5022_v45 = vld [vmem:[%s7056_s3 + $0x52c] ss:$16 sps:$4 sm:$0xff]   ;;  %v5017_v46 = vld [vmem:[%s7056_s3 + $0x520] ss:$16 sps:$4 sm:$0xff]  }
  0x85   : > { %2253 = vmatpush1.bf16.msra.mxu0 %v4925_v47  ;;  %2417 = vmatpush1.bf16.msra.mxu1 %v4928_v48  ;;  %v5020_v47 = vld [vmem:[%s7056_s3 + $0x528] ss:$16 sps:$4 sm:$0xff]   ;;  %v5025_v48 = vld [vmem:[%s7056_s3 + $0x544] ss:$16 sps:$4 sm:$0xff]  }
  0x86   : > { %2254 = vmatprep.subr.bf16.mxu0 %v4933_v49  ;;  %2418 = vmatprep.subr.bf16.mxu1 %v4936_v50  ;;  %v5028_v49 = vld [vmem:[%s7056_s3 + $0x54c] ss:$16 sps:$4 sm:$0xff]   ;;  %v5023_v50 = vld [vmem:[%s7056_s3 + $0x540] ss:$16 sps:$4 sm:$0xff]  }
  0x89   : > { %2255 = vmatpush1.bf16.msra.mxu0 %v4931_v51  ;;  %2419 = vmatpush1.bf16.msra.mxu1 %v4934_v52  ;;  %v5026_v51 = vld [vmem:[%s7056_s3 + $0x548] ss:$16 sps:$4 sm:$0xff]   ;;  %v5031_v52 = vld [vmem:[%s7056_s3 + $0x564] ss:$16 sps:$4 sm:$0xff]  }
  0x8a   : > { %2256 = vmatprep.subr.bf16.mxu0 %v4939_v53  ;;  %2420 = vmatprep.subr.bf16.mxu1 %v4942_v54  ;;  %v5034_v53 = vld [vmem:[%s7056_s3 + $0x56c] ss:$16 sps:$4 sm:$0xff]   ;;  %v5029_v54 = vld [vmem:[%s7056_s3 + $0x560] ss:$16 sps:$4 sm:$0xff]  }
  0x8d   : > { %2257 = vmatpush1.bf16.msra.mxu0 %v4937_v55  ;;  %2421 = vmatpush1.bf16.msra.mxu1 %v4940_v56  ;;  %v5032_v55 = vld [vmem:[%s7056_s3 + $0x568] ss:$16 sps:$4 sm:$0xff]   ;;  %v5037_v56 = vld [vmem:[%s7056_s3 + $0x584] ss:$16 sps:$4 sm:$0xff]  }
  0x8e   : > { %2258 = vmatprep.subr.bf16.mxu0 %v4945_v57  ;;  %2422 = vmatprep.subr.bf16.mxu1 %v4948_v58  ;;  %v5040_v57 = vld [vmem:[%s7056_s3 + $0x58c] ss:$16 sps:$4 sm:$0xff]   ;;  %v5035_v58 = vld [vmem:[%s7056_s3 + $0x580] ss:$16 sps:$4 sm:$0xff]  }
  0x91   : > { %2259 = vmatpush1.bf16.msra.mxu0 %v4943_v59  ;;  %2423 = vmatpush1.bf16.msra.mxu1 %v4946_v60  ;;  %v5038_v59 = vld [vmem:[%s7056_s3 + $0x588] ss:$16 sps:$4 sm:$0xff]   ;;  %v5043_v60 = vld [vmem:[%s7056_s3 + $0x5a4] ss:$16 sps:$4 sm:$0xff]  }
  0x92   : > { %2260 = vmatprep.subr.bf16.mxu0 %v4951_v61  ;;  %2424 = vmatprep.subr.bf16.mxu1 %v4954_v62  ;;  %v5046_v61 = vld [vmem:[%s7056_s3 + $0x5ac] ss:$16 sps:$4 sm:$0xff]   ;;  %v5041_v62 = vld [vmem:[%s7056_s3 + $0x5a0] ss:$16 sps:$4 sm:$0xff]  }
  0x95   : > { %2261 = vmatpush1.bf16.msra.mxu0 %v4949_v63  ;;  %2425 = vmatpush1.bf16.msra.mxu1 %v4952_v0  ;;  %v5044_v63 = vld [vmem:[%s7056_s3 + $0x5a8] ss:$16 sps:$4 sm:$0xff]   ;;  %v5049_v0 = vld [vmem:[%s7056_s3 + $0x5c4] ss:$16 sps:$4 sm:$0xff]  }
  0x96   : > { %2262 = vmatprep.subr.bf16.mxu0 %v4957_v1  ;;  %2426 = vmatprep.subr.bf16.mxu1 %v4960_v2  ;;  %v5052_v1 = vld [vmem:[%s7056_s3 + $0x5cc] ss:$16 sps:$4 sm:$0xff]   ;;  %v5047_v2 = vld [vmem:[%s7056_s3 + $0x5c0] ss:$16 sps:$4 sm:$0xff]  }
  0x99   : > { %2263 = vmatpush1.bf16.msra.mxu0 %v4955_v3  ;;  %2427 = vmatpush1.bf16.msra.mxu1 %v4958_v4  ;;  %v5050_v3 = vld [vmem:[%s7056_s3 + $0x5c8] ss:$16 sps:$4 sm:$0xff]   ;;  %v5055_v4 = vld [vmem:[%s7056_s3 + $0x5e4] ss:$16 sps:$4 sm:$0xff]  }
  0x9a   : > { %2273 = vmatprep.subr.bf16.mxu0 %v4965_v5  ;;  %2437 = vmatprep.subr.bf16.mxu1 %v4968_v6  ;;  %v5058_v5 = vld [vmem:[%s7056_s3 + $0x5ec] ss:$16 sps:$4 sm:$0xff]   ;;  %v5053_v6 = vld [vmem:[%s7056_s3 + $0x5e0] ss:$16 sps:$4 sm:$0xff]  }
  0x9c   : > { %2265 = vmatmul.mubr.bf16.vlgmr.msra.gmra.mrb[0].mxu0 %v4147_v7  ;;  %2429 = vmatmul.mubr.bf16.vlgmr.msra.gmra.mrb[0].mxu1 %v4147_v7  ;;  %v5056_v7 = vld [vmem:[%s7056_s3 + $0x5e8] ss:$16 sps:$4 sm:$0xff]  }
  0x9d   : > { %2274 = vmatpush1.bf16.msra.mxu0 %v4963_v8  ;;  %2438 = vmatpush1.bf16.msra.mxu1 %v4966_v9  ;;  %v5063_v8 = vld [vmem:[%s7056_s3 + $0x604] ss:$16 sps:$4 sm:$0xff]   ;;  %v5066_v9 = vld [vmem:[%s7056_s3 + $0x60c] ss:$16 sps:$4 sm:$0xff]  }
  0x9e   : > { %2275 = vmatprep.subr.bf16.mxu0 %v4971_v10  ;;  %2439 = vmatprep.subr.bf16.mxu1 %v4974_v12  ;;  %v5061_v10 = vld [vmem:[%s7056_s3 + $0x600] ss:$16 sps:$4 sm:$0xff]   ;;  %v5064_v12 = vld [vmem:[%s7056_s3 + $0x608] ss:$16 sps:$4 sm:$0xff]  }
  0x9f   : > { %2305 = vmatprep.mubr.bf16.mxu0 %v4150_v13  ;;  %2469 = vmatprep.mubr.bf16.mxu1 %v4150_v13  ;;  %v6214_v13 = vld [vmem:[%s5742_s22 + $0x18] sm:$0xff]  ;;  %s5458_s22 = smov [#allocation2]  }
  0xa0   : > { %s5298_s0 = sshll.u32 %s5458_s22, 4  ;;  %s5299_s0 = int_to_ptr.vmem [resolvable:$false] %s5298_s0 }
  0xa1   : > { %2276 = vmatpush1.bf16.msra.mxu0 %v4969_v14  ;;  %2440 = vmatpush1.bf16.msra.mxu1 %v4972_v15  ;;  %v4149_v14 = vcombine.low %v6020_v11, %v6020_v11  ;;  %v5069_v15 = vld [vmem:[%s7056_s3 + $0x624] ss:$16 sps:$4 sm:$0xff]   ;;  %v5070_v11 = vld [vmem:[%s7056_s3 + $0x628] ss:$16 sps:$4 sm:$0xff]  }
  0xa2   : > { %2277 = vmatprep.subr.bf16.mxu0 %v4977_v16  ;;  %2441 = vmatprep.subr.bf16.mxu1 %v4980_v17  ;;  %v5072_v16 = vld [vmem:[%s7056_s3 + $0x62c] ss:$16 sps:$4 sm:$0xff]   ;;  %v5067_v17 = vld [vmem:[%s7056_s3 + $0x620] ss:$16 sps:$4 sm:$0xff]  }
  0xa5   : > { %2278 = vmatpush1.bf16.msra.mxu0 %v4975_v18  ;;  %2442 = vmatpush1.bf16.msra.mxu1 %v4978_v19  ;;  %v4152_v18 = vcombine.high %v6214_v13, %v6214_v13  ;;  %v5075_v19 = vld [vmem:[%s7056_s3 + $0x644] ss:$16 sps:$4 sm:$0xff]  }
  0xa6   : > { %2279 = vmatprep.subr.bf16.mxu0 %v4983_v20  ;;  %2443 = vmatprep.subr.bf16.mxu1 %v4986_v21  ;;  %v5078_v20 = vld [vmem:[%s7056_s3 + $0x64c] ss:$16 sps:$4 sm:$0xff]   ;;  %v5073_v21 = vld [vmem:[%s7056_s3 + $0x640] ss:$16 sps:$4 sm:$0xff]  }
  0xa9   : > { %2280 = vmatpush1.bf16.msra.mxu0 %v4981_v22  ;;  %2444 = vmatpush1.bf16.msra.mxu1 %v4984_v23  ;;  %v5076_v22 = vld [vmem:[%s7056_s3 + $0x648] ss:$16 sps:$4 sm:$0xff]   ;;  %v5081_v23 = vld [vmem:[%s7056_s3 + $0x664] ss:$16 sps:$4 sm:$0xff]  }
  0xaa   : > { %2281 = vmatprep.subr.bf16.mxu0 %v4989_v24  ;;  %2445 = vmatprep.subr.bf16.mxu1 %v4992_v25  ;;  %v5084_v24 = vld [vmem:[%s7056_s3 + $0x66c] ss:$16 sps:$4 sm:$0xff]   ;;  %v5079_v25 = vld [vmem:[%s7056_s3 + $0x660] ss:$16 sps:$4 sm:$0xff]  }
  0xad   : > { %2282 = vmatpush1.bf16.msra.mxu0 %v4987_v26  ;;  %2446 = vmatpush1.bf16.msra.mxu1 %v4990_v27  ;;  %v5082_v26 = vld [vmem:[%s7056_s3 + $0x668] ss:$16 sps:$4 sm:$0xff]   ;;  %v5087_v27 = vld [vmem:[%s7056_s3 + $0x684] ss:$16 sps:$4 sm:$0xff]  }
  0xae   : > { %2283 = vmatprep.subr.bf16.mxu0 %v4995_v28  ;;  %2447 = vmatprep.subr.bf16.mxu1 %v4998_v29  ;;  %v5090_v28 = vld [vmem:[%s7056_s3 + $0x68c] ss:$16 sps:$4 sm:$0xff]   ;;  %v5085_v29 = vld [vmem:[%s7056_s3 + $0x680] ss:$16 sps:$4 sm:$0xff]  }
  0xb1   : > { %2284 = vmatpush1.bf16.msra.mxu0 %v4993_v30  ;;  %2448 = vmatpush1.bf16.msra.mxu1 %v4996_v31  ;;  %v5088_v30 = vld [vmem:[%s7056_s3 + $0x688] ss:$16 sps:$4 sm:$0xff]   ;;  %v5093_v31 = vld [vmem:[%s7056_s3 + $0x6a4] ss:$16 sps:$4 sm:$0xff]  }
  0xb2   : > { %2285 = vmatprep.subr.bf16.mxu0 %v5001_v32  ;;  %2449 = vmatprep.subr.bf16.mxu1 %v5004_v33  ;;  %v5096_v32 = vld [vmem:[%s7056_s3 + $0x6ac] ss:$16 sps:$4 sm:$0xff]   ;;  %v5091_v33 = vld [vmem:[%s7056_s3 + $0x6a0] ss:$16 sps:$4 sm:$0xff]  }
  0xb5   : > { %2286 = vmatpush1.bf16.msra.mxu0 %v4999_v34  ;;  %2450 = vmatpush1.bf16.msra.mxu1 %v5002_v35  ;;  %v5094_v34 = vld [vmem:[%s7056_s3 + $0x6a8] ss:$16 sps:$4 sm:$0xff]   ;;  %v5099_v35 = vld [vmem:[%s7056_s3 + $0x6c4] ss:$16 sps:$4 sm:$0xff]  }
  0xb6   : > { %2287 = vmatprep.subr.bf16.mxu0 %v5007_v36  ;;  %2451 = vmatprep.subr.bf16.mxu1 %v5010_v37  ;;  %v5102_v36 = vld [vmem:[%s7056_s3 + $0x6cc] ss:$16 sps:$4 sm:$0xff]   ;;  %v5097_v37 = vld [vmem:[%s7056_s3 + $0x6c0] ss:$16 sps:$4 sm:$0xff]  }
  0xb9   : > { %2288 = vmatpush1.bf16.msra.mxu0 %v5005_v38  ;;  %2452 = vmatpush1.bf16.msra.mxu1 %v5008_v39  ;;  %v5100_v38 = vld [vmem:[%s7056_s3 + $0x6c8] ss:$16 sps:$4 sm:$0xff]   ;;  %v5105_v39 = vld [vmem:[%s7056_s3 + $0x6e4] ss:$16 sps:$4 sm:$0xff]  }
  0xba   : > { %2289 = vmatprep.subr.bf16.mxu0 %v5013_v40  ;;  %2453 = vmatprep.subr.bf16.mxu1 %v5016_v41  ;;  %v5108_v40 = vld [vmem:[%s7056_s3 + $0x6ec] ss:$16 sps:$4 sm:$0xff]   ;;  %v5103_v41 = vld [vmem:[%s7056_s3 + $0x6e0] ss:$16 sps:$4 sm:$0xff]  }
  0xbd   : > { %2290 = vmatpush1.bf16.msra.mxu0 %v5011_v42  ;;  %2454 = vmatpush1.bf16.msra.mxu1 %v5014_v43  ;;  %v5106_v42 = vld [vmem:[%s7056_s3 + $0x6e8] ss:$16 sps:$4 sm:$0xff]   ;;  %v5111_v43 = vld [vmem:[%s7056_s3 + $0x704] ss:$16 sps:$4 sm:$0xff]  }
  0xbe   : > { %2291 = vmatprep.subr.bf16.mxu0 %v5019_v44  ;;  %2455 = vmatprep.subr.bf16.mxu1 %v5022_v45  ;;  %v5114_v44 = vld [vmem:[%s7056_s3 + $0x70c] ss:$16 sps:$4 sm:$0xff]   ;;  %v5109_v45 = vld [vmem:[%s7056_s3 + $0x700] ss:$16 sps:$4 sm:$0xff]  }
  0xc1   : > { %2292 = vmatpush1.bf16.msra.mxu0 %v5017_v46  ;;  %2456 = vmatpush1.bf16.msra.mxu1 %v5020_v47  ;;  %v5112_v46 = vld [vmem:[%s7056_s3 + $0x708] ss:$16 sps:$4 sm:$0xff]   ;;  %v5117_v47 = vld [vmem:[%s7056_s3 + $0x724] ss:$16 sps:$4 sm:$0xff]  }
  0xc2   : > { %2293 = vmatprep.subr.bf16.mxu0 %v5025_v48  ;;  %2457 = vmatprep.subr.bf16.mxu1 %v5028_v49  ;;  %v5120_v48 = vld [vmem:[%s7056_s3 + $0x72c] ss:$16 sps:$4 sm:$0xff]   ;;  %v5115_v49 = vld [vmem:[%s7056_s3 + $0x720] ss:$16 sps:$4 sm:$0xff]  }
  0xc5   : > { %2294 = vmatpush1.bf16.msra.mxu0 %v5023_v50  ;;  %2458 = vmatpush1.bf16.msra.mxu1 %v5026_v51  ;;  %v5118_v50 = vld [vmem:[%s7056_s3 + $0x728] ss:$16 sps:$4 sm:$0xff]   ;;  %v5123_v51 = vld [vmem:[%s7056_s3 + $0x744] ss:$16 sps:$4 sm:$0xff]  }
  0xc6   : > { %2295 = vmatprep.subr.bf16.mxu0 %v5031_v52  ;;  %2459 = vmatprep.subr.bf16.mxu1 %v5034_v53  ;;  %v5126_v52 = vld [vmem:[%s7056_s3 + $0x74c] ss:$16 sps:$4 sm:$0xff]   ;;  %v5121_v53 = vld [vmem:[%s7056_s3 + $0x740] ss:$16 sps:$4 sm:$0xff]  }
  0xc9   : > { %2296 = vmatpush1.bf16.msra.mxu0 %v5029_v54  ;;  %2460 = vmatpush1.bf16.msra.mxu1 %v5032_v55  ;;  %v5124_v54 = vld [vmem:[%s7056_s3 + $0x748] ss:$16 sps:$4 sm:$0xff]   ;;  %v5129_v55 = vld [vmem:[%s7056_s3 + $0x764] ss:$16 sps:$4 sm:$0xff]  }
  0xca   : > { %2297 = vmatprep.subr.bf16.mxu0 %v5037_v56  ;;  %2461 = vmatprep.subr.bf16.mxu1 %v5040_v57  ;;  %v5132_v56 = vld [vmem:[%s7056_s3 + $0x76c] ss:$16 sps:$4 sm:$0xff]   ;;  %v5127_v57 = vld [vmem:[%s7056_s3 + $0x760] ss:$16 sps:$4 sm:$0xff]  }
  0xcd   : > { %2298 = vmatpush1.bf16.msra.mxu0 %v5035_v58  ;;  %2462 = vmatpush1.bf16.msra.mxu1 %v5038_v59  ;;  %v5130_v58 = vld [vmem:[%s7056_s3 + $0x768] ss:$16 sps:$4 sm:$0xff]   ;;  %v5135_v59 = vld [vmem:[%s7056_s3 + $0x784] ss:$16 sps:$4 sm:$0xff]  }
  0xce   : > { %2299 = vmatprep.subr.bf16.mxu0 %v5043_v60  ;;  %2463 = vmatprep.subr.bf16.mxu1 %v5046_v61  ;;  %v5138_v60 = vld [vmem:[%s7056_s3 + $0x78c] ss:$16 sps:$4 sm:$0xff]   ;;  %v5133_v61 = vld [vmem:[%s7056_s3 + $0x780] ss:$16 sps:$4 sm:$0xff]  }
  0xd1   : > { %2300 = vmatpush1.bf16.msra.mxu0 %v5041_v62  ;;  %2464 = vmatpush1.bf16.msra.mxu1 %v5044_v63  ;;  %v5136_v62 = vld [vmem:[%s7056_s3 + $0x788] ss:$16 sps:$4 sm:$0xff]   ;;  %v5141_v63 = vld [vmem:[%s7056_s3 + $0x7a4] ss:$16 sps:$4 sm:$0xff]  }
  0xd2   : > { %2301 = vmatprep.subr.bf16.mxu0 %v5049_v0  ;;  %2465 = vmatprep.subr.bf16.mxu1 %v5052_v1  ;;  %v5144_v0 = vld [vmem:[%s7056_s3 + $0x7ac] ss:$16 sps:$4 sm:$0xff]   ;;  %v5139_v1 = vld [vmem:[%s7056_s3 + $0x7a0] ss:$16 sps:$4 sm:$0xff]  }
  0xd5   : > { %2302 = vmatpush1.bf16.msra.mxu0 %v5047_v2  ;;  %2466 = vmatpush1.bf16.msra.mxu1 %v5050_v3  ;;  %v5142_v2 = vld [vmem:[%s7056_s3 + $0x7a8] ss:$16 sps:$4 sm:$0xff]   ;;  %v5147_v3 = vld [vmem:[%s7056_s3 + $0x7c4] ss:$16 sps:$4 sm:$0xff]  }
  0xd6   : > { %2303 = vmatprep.subr.bf16.mxu0 %v5055_v4  ;;  %2467 = vmatprep.subr.bf16.mxu1 %v5058_v5  ;;  %v5150_v4 = vld [vmem:[%s7056_s3 + $0x7cc] ss:$16 sps:$4 sm:$0xff]   ;;  %v5145_v5 = vld [vmem:[%s7056_s3 + $0x7c0] ss:$16 sps:$4 sm:$0xff]  }
  0xd9   : > { %2304 = vmatpush1.bf16.msra.mxu0 %v5053_v6  ;;  %2468 = vmatpush1.bf16.msra.mxu1 %v5056_v7  ;;  %v5148_v6 = vld [vmem:[%s7056_s3 + $0x7c8] ss:$16 sps:$4 sm:$0xff]   ;;  %v5153_v7 = vld [vmem:[%s7056_s3 + $0x7e4] ss:$16 sps:$4 sm:$0xff]  }
  0xda   : > { %2314 = vmatprep.subr.bf16.mxu0 %v5063_v8  ;;  %2478 = vmatprep.subr.bf16.mxu1 %v5066_v9  ;;  %v5156_v8 = vld [vmem:[%s7056_s3 + $0x7ec] ss:$16 sps:$4 sm:$0xff]   ;;  %v5151_v9 = vld [vmem:[%s7056_s3 + $0x7e0] ss:$16 sps:$4 sm:$0xff]  }
  0xdc   : > { %2306 = vmatmul.mubr.bf16.vlgmr.msra.gmra.mrb[0].mxu0 %v4149_v14  ;;  %2470 = vmatmul.mubr.bf16.vlgmr.msra.gmra.mrb[0].mxu1 %v4149_v14  ;;  %v4151_v14 = vcombine.low %v6214_v13, %v6214_v13  ;;  %v5167_v13 = vld [vmem:[%s7058_s5 + $0x24] ss:$8 sps:$4 sm:$0xff]  }
  0xdd   : > { %2315 = vmatpush1.bf16.msra.mxu0 %v5061_v10  ;;  %2479 = vmatpush1.bf16.msra.mxu1 %v5064_v12  ;;  %v5154_v10 = vld [vmem:[%s7056_s3 + $0x7e8] ss:$16 sps:$4 sm:$0xff]   ;;  %v5161_v12 = vld [vmem:[%s7058_s5 + $0x4] ss:$8 sps:$4 sm:$0xff]  }
  0xde   : > { %2316 = vmatprep.subr.bf16.mxu0 %v5069_v15  ;;  %2480 = vmatprep.subr.bf16.mxu1 %v5072_v16  ;;  %v5159_v15 = vld [vmem:[%s7058_s5] ss:$8 sps:$4 sm:$0xff]   ;;  %v5164_v16 = vld [vmem:[%s7058_s5 + $0x14] ss:$8 sps:$4 sm:$0xff]  }
  0xdf   : > { %2346 = vmatprep.mubr.bf16.mxu0 %v4152_v18  ;;  %2510 = vmatprep.mubr.bf16.mxu1 %v4152_v18  ;;  %v5170_v18 = vld [vmem:[%s7058_s5 + $0x34] ss:$8 sps:$4 sm:$0xff]  }
  0xe1   : > { %2317 = vmatpush1.bf16.msra.mxu0 %v5067_v17  ;;  %2481 = vmatpush1.bf16.msra.mxu1 %v5070_v11  ;;  %v5162_v17 = vld [vmem:[%s7058_s5 + $0x10] ss:$8 sps:$4 sm:$0xff]   ;;  %v5165_v11 = vld [vmem:[%s7058_s5 + $0x20] ss:$8 sps:$4 sm:$0xff]  }
  0xe2   : > { %2318 = vmatprep.subr.bf16.mxu0 %v5075_v19  ;;  %2482 = vmatprep.subr.bf16.mxu1 %v5078_v20  ;;  %v5168_v19 = vld [vmem:[%s7058_s5 + $0x30] ss:$8 sps:$4 sm:$0xff]   ;;  %v5173_v20 = vld [vmem:[%s7058_s5 + $0x44] ss:$8 sps:$4 sm:$0xff]  }
  0xe5   : > { %2319 = vmatpush1.bf16.msra.mxu0 %v5073_v21  ;;  %2483 = vmatpush1.bf16.msra.mxu1 %v5076_v22  ;;  %v5171_v21 = vld [vmem:[%s7058_s5 + $0x40] ss:$8 sps:$4 sm:$0xff]   ;;  %v5176_v22 = vld [vmem:[%s7058_s5 + $0x54] ss:$8 sps:$4 sm:$0xff]  }
  0xe6   : > { %2320 = vmatprep.subr.bf16.mxu0 %v5081_v23  ;;  %2484 = vmatprep.subr.bf16.mxu1 %v5084_v24  ;;  %v5174_v23 = vld [vmem:[%s7058_s5 + $0x50] ss:$8 sps:$4 sm:$0xff]   ;;  %v5179_v24 = vld [vmem:[%s7058_s5 + $0x64] ss:$8 sps:$4 sm:$0xff]  }
  0xe9   : > { %2321 = vmatpush1.bf16.msra.mxu0 %v5079_v25  ;;  %2485 = vmatpush1.bf16.msra.mxu1 %v5082_v26  ;;  %v5177_v25 = vld [vmem:[%s7058_s5 + $0x60] ss:$8 sps:$4 sm:$0xff]   ;;  %v5182_v26 = vld [vmem:[%s7058_s5 + $0x74] ss:$8 sps:$4 sm:$0xff]  }
  0xea   : > { %2322 = vmatprep.subr.bf16.mxu0 %v5087_v27  ;;  %2486 = vmatprep.subr.bf16.mxu1 %v5090_v28  ;;  %v5180_v27 = vld [vmem:[%s7058_s5 + $0x70] ss:$8 sps:$4 sm:$0xff]   ;;  %v5185_v28 = vld [vmem:[%s7058_s5 + $0x84] ss:$8 sps:$4 sm:$0xff]  }
  0xed   : > { %2323 = vmatpush1.bf16.msra.mxu0 %v5085_v29  ;;  %2487 = vmatpush1.bf16.msra.mxu1 %v5088_v30  ;;  %v5183_v29 = vld [vmem:[%s7058_s5 + $0x80] ss:$8 sps:$4 sm:$0xff]   ;;  %v5188_v30 = vld [vmem:[%s7058_s5 + $0x94] ss:$8 sps:$4 sm:$0xff]  }
  0xee   : > { %2324 = vmatprep.subr.bf16.mxu0 %v5093_v31  ;;  %2488 = vmatprep.subr.bf16.mxu1 %v5096_v32  ;;  %v5186_v31 = vld [vmem:[%s7058_s5 + $0x90] ss:$8 sps:$4 sm:$0xff]   ;;  %v5191_v32 = vld [vmem:[%s7058_s5 + $0xa4] ss:$8 sps:$4 sm:$0xff]  }
  0xf1   : > { %2325 = vmatpush1.bf16.msra.mxu0 %v5091_v33  ;;  %2489 = vmatpush1.bf16.msra.mxu1 %v5094_v34  ;;  %v5189_v33 = vld [vmem:[%s7058_s5 + $0xa0] ss:$8 sps:$4 sm:$0xff]   ;;  %v5194_v34 = vld [vmem:[%s7058_s5 + $0xb4] ss:$8 sps:$4 sm:$0xff]  }
  0xf2   : > { %2326 = vmatprep.subr.bf16.mxu0 %v5099_v35  ;;  %2490 = vmatprep.subr.bf16.mxu1 %v5102_v36  ;;  %v5192_v35 = vld [vmem:[%s7058_s5 + $0xb0] ss:$8 sps:$4 sm:$0xff]   ;;  %v5197_v36 = vld [vmem:[%s7058_s5 + $0xc4] ss:$8 sps:$4 sm:$0xff]  }
  0xf5   : > { %2327 = vmatpush1.bf16.msra.mxu0 %v5097_v37  ;;  %2491 = vmatpush1.bf16.msra.mxu1 %v5100_v38  ;;  %v5195_v37 = vld [vmem:[%s7058_s5 + $0xc0] ss:$8 sps:$4 sm:$0xff]   ;;  %v5200_v38 = vld [vmem:[%s7058_s5 + $0xd4] ss:$8 sps:$4 sm:$0xff]  }
  0xf6   : > { %2328 = vmatprep.subr.bf16.mxu0 %v5105_v39  ;;  %2492 = vmatprep.subr.bf16.mxu1 %v5108_v40  ;;  %v5198_v39 = vld [vmem:[%s7058_s5 + $0xd0] ss:$8 sps:$4 sm:$0xff]   ;;  %v5203_v40 = vld [vmem:[%s7058_s5 + $0xe4] ss:$8 sps:$4 sm:$0xff]  }
  0xf9   : > { %2329 = vmatpush1.bf16.msra.mxu0 %v5103_v41  ;;  %2493 = vmatpush1.bf16.msra.mxu1 %v5106_v42  ;;  %v5201_v41 = vld [vmem:[%s7058_s5 + $0xe0] ss:$8 sps:$4 sm:$0xff]   ;;  %v5206_v42 = vld [vmem:[%s7058_s5 + $0xf4] ss:$8 sps:$4 sm:$0xff]  }
  0xfa   : > { %2330 = vmatprep.subr.bf16.mxu0 %v5111_v43  ;;  %2494 = vmatprep.subr.bf16.mxu1 %v5114_v44  ;;  %v5204_v43 = vld [vmem:[%s7058_s5 + $0xf0] ss:$8 sps:$4 sm:$0xff]   ;;  %v5209_v44 = vld [vmem:[%s7058_s5 + $0x104] ss:$8 sps:$4 sm:$0xff]  }
  0xfd   : > { %2331 = vmatpush1.bf16.msra.mxu0 %v5109_v45  ;;  %2495 = vmatpush1.bf16.msra.mxu1 %v5112_v46  ;;  %v5233_v45 = vld [vmem:[%s7060_s7] sm:$0xff]   ;;  %v5450_v46 = vmov 0  }
  0xfe   : > { %2332 = vmatprep.subr.bf16.mxu0 %v5117_v47  ;;  %2496 = vmatprep.subr.bf16.mxu1 %v5120_v48  ;;  %v5234_v47 = vld [vmem:[%s7060_s7 + $0x8] sm:$0xff]   ;;  %v5235_v48 = vld [vmem:[%s7060_s7 + $0x10] sm:$0xff]  }
 0x101   : > { %2333 = vmatpush1.bf16.msra.mxu0 %v5115_v49  ;;  %2497 = vmatpush1.bf16.msra.mxu1 %v5118_v50  ;;  %v5236_v49 = vld [vmem:[%s7060_s7 + $0x18] sm:$0xff]   ;;  %v5237_v50 = vld [vmem:[%s7060_s7 + $0x20] sm:$0xff]  }
 0x102   : > { %2334 = vmatprep.subr.bf16.mxu0 %v5123_v51  ;;  %2498 = vmatprep.subr.bf16.mxu1 %v5126_v52  ;;  %v5238_v51 = vld [vmem:[%s7060_s7 + $0x28] sm:$0xff]   ;;  %v5239_v52 = vld [vmem:[%s7060_s7 + $0x30] sm:$0xff]  }
 0x105   : > { %2335 = vmatpush1.bf16.msra.mxu0 %v5121_v53  ;;  %2499 = vmatpush1.bf16.msra.mxu1 %v5124_v54  ;;  %v863_v53 = vlaneseq }
 0x106   : > { %2336 = vmatprep.subr.bf16.mxu0 %v5129_v55  ;;  %2500 = vmatprep.subr.bf16.mxu1 %v5132_v56  ;;  %v861_v56 = vld [vmem:[%s7057_s4] sm:$0xf] }
 0x107   : > { %v6531_v54 = vshrl.u32 %v863_v53, 7  ;;  %vm3806_vm11 = vcmp.lt.s32.totalorder %v863_v53, 256 }
 0x109   : > { %2337 = vmatpush1.bf16.msra.mxu0 %v5127_v57  ;;  %2501 = vmatpush1.bf16.msra.mxu1 %v5130_v58  ;;  %v865_v55 = vsub.s32 0, %v6531_v54  ;;  %v869_v57 = vsub.s32 1, %v6531_v54  ;;  %v877_v58 = vsub.s32 3, %v6531_v54 }
 0x10a   : > { %2338 = vmatprep.subr.bf16.mxu0 %v5135_v59  ;;  %2502 = vmatprep.subr.bf16.mxu1 %v5138_v60 }
 0x10b   : > { %v866_v59 = vrot.slane %v861_v56, %v865_v55  ;;  %v870_v60 = vrot.slane %v861_v56, %v869_v57 }
 0x10d   : > { %2339 = vmatpush1.bf16.msra.mxu0 %v5133_v61  ;;  %2503 = vmatpush1.bf16.msra.mxu1 %v5136_v62  ;;  %v878_v61 = vrot.slane %v861_v56, %v877_v58 }
 0x10e   : > { %2340 = vmatprep.subr.bf16.mxu0 %v5141_v63  ;;  %2504 = vmatprep.subr.bf16.mxu1 %v5144_v0 }
 0x111   : > { %2341 = vmatpush1.bf16.msra.mxu0 %v5139_v1  ;;  %2505 = vmatpush1.bf16.msra.mxu1 %v5142_v2 }
 0x112   : > { %2342 = vmatprep.subr.bf16.mxu0 %v5147_v3  ;;  %2506 = vmatprep.subr.bf16.mxu1 %v5150_v4 }
 0x115   : > { %2343 = vmatpush1.bf16.msra.mxu0 %v5145_v5  ;;  %2507 = vmatpush1.bf16.msra.mxu1 %v5148_v6 }
 0x116   : > { %2344 = vmatprep.subr.bf16.mxu0 %v5153_v7  ;;  %2508 = vmatprep.subr.bf16.mxu1 %v5156_v8 }
 0x119   : > { %2345 = vmatpush1.bf16.msra.mxu0 %v5151_v9  ;;  %2509 = vmatpush1.bf16.msra.mxu1 %v5154_v10 }
 0x11a   : > { %2844 = vmatprep.subr.bf16.mxu0 %v5161_v12  ;;  %3013 = vmatprep.subr.bf16.mxu1 %v5450_v46 }
 0x11c   : > { %2347 = vmatmul.mubr.bf16.vlgmr.msra.gmra.mrb[0].mxu0 %v4151_v14  ;;  %2511 = vmatmul.mubr.bf16.vlgmr.msra.gmra.mrb[0].mxu1 %v4151_v14 }
 0x11d   : > { %2845 = vmatpush1.bf16.msra.mxu0 %v5159_v15  ;;  %3014 = vmatpush1.bf16.msra.mxu1 %v5233_v45  ;;  %v5207_v15 = vld [vmem:[%s7058_s5 + $0x100] ss:$8 sps:$4 sm:$0xff]  }
 0x11e   : > { %2846 = vmatprep.subr.bf16.mxu0 %v5164_v16  ;;  %3015 = vmatprep.subr.bf16.mxu1 %v5450_v46 }
 0x121   : > { %2847 = vmatpush1.bf16.msra.mxu0 %v5162_v17  ;;  %3016 = vmatpush1.bf16.msra.mxu1 %v5234_v47  ;;  %v5212_v17 = vld [vmem:[%s7058_s5 + $0x114] ss:$8 sps:$4 sm:$0xff]  }
 0x122   : > { %2848 = vmatprep.subr.bf16.mxu0 %v5167_v13  ;;  %3017 = vmatprep.subr.bf16.mxu1 %v5450_v46 }
 0x125   : > { %2849 = vmatpush1.bf16.msra.mxu0 %v5165_v11  ;;  %3018 = vmatpush1.bf16.msra.mxu1 %v5235_v48  ;;  %v5210_v11 = vld [vmem:[%s7058_s5 + $0x110] ss:$8 sps:$4 sm:$0xff]  }
 0x126   : > { %2850 = vmatprep.subr.bf16.mxu0 %v5170_v18  ;;  %3019 = vmatprep.subr.bf16.mxu1 %v5450_v46  ;;  %v5215_v18 = vld [vmem:[%s7058_s5 + $0x124] ss:$8 sps:$4 sm:$0xff]  }
 0x129   : > { %2851 = vmatpush1.bf16.msra.mxu0 %v5168_v19  ;;  %3020 = vmatpush1.bf16.msra.mxu1 %v5236_v49  ;;  %v5213_v19 = vld [vmem:[%s7058_s5 + $0x120] ss:$8 sps:$4 sm:$0xff]  }
 0x12a   : > { %2852 = vmatprep.subr.bf16.mxu0 %v5173_v20  ;;  %3021 = vmatprep.subr.bf16.mxu1 %v5450_v46  ;;  %v5218_v20 = vld [vmem:[%s7058_s5 + $0x134] ss:$8 sps:$4 sm:$0xff]  }
 0x12d   : > { %2853 = vmatpush1.bf16.msra.mxu0 %v5171_v21  ;;  %3022 = vmatpush1.bf16.msra.mxu1 %v5237_v50  ;;  %v5216_v21 = vld [vmem:[%s7058_s5 + $0x130] ss:$8 sps:$4 sm:$0xff]  }
 0x12e   : > { %2854 = vmatprep.subr.bf16.mxu0 %v5176_v22  ;;  %3023 = vmatprep.subr.bf16.mxu1 %v5450_v46  ;;  %v5221_v22 = vld [vmem:[%s7058_s5 + $0x144] ss:$8 sps:$4 sm:$0xff]  }
 0x131   : > { %2855 = vmatpush1.bf16.msra.mxu0 %v5174_v23  ;;  %3024 = vmatpush1.bf16.msra.mxu1 %v5238_v51  ;;  %v5219_v23 = vld [vmem:[%s7058_s5 + $0x140] ss:$8 sps:$4 sm:$0xff]  }
 0x132   : > { %2856 = vmatprep.subr.bf16.mxu0 %v5179_v24  ;;  %3025 = vmatprep.subr.bf16.mxu1 %v5450_v46  ;;  %v5224_v24 = vld [vmem:[%s7058_s5 + $0x154] ss:$8 sps:$4 sm:$0xff]  }
 0x135   : > { %2857 = vmatpush1.bf16.msra.mxu0 %v5177_v25  ;;  %3026 = vmatpush1.bf16.msra.mxu1 %v5239_v52  ;;  %v5222_v25 = vld [vmem:[%s7058_s5 + $0x150] ss:$8 sps:$4 sm:$0xff]  }
 0x136   : > { %2858 = vmatprep.subr.bf16.mxu0 %v5182_v26  ;;  %3027 = vmatprep.subr.bf16.mxu1 %v5450_v46  ;;  %v873_v26 = vsub.s32 2, %v6531_v54 }
 0x139   : > { %2859 = vmatpush1.bf16.msra.mxu0 %v5180_v27  ;;  %v5227_v27 = vld [vmem:[%s7058_s5 + $0x164] ss:$8 sps:$4 sm:$0xff]  }
 0x13a   : > { %2860 = vmatprep.subr.bf16.mxu0 %v5185_v28  ;;  %v5225_v28 = vld [vmem:[%s7058_s5 + $0x160] ss:$8 sps:$4 sm:$0xff]  }
 0x13d   : > { %2861 = vmatpush1.bf16.msra.mxu0 %v5183_v29  ;;  %v874_v29 = vrot.slane %v861_v56, %v873_v26 }
 0x13e   : > { %2862 = vmatprep.subr.bf16.mxu0 %v5188_v30  ;;  %v5230_v30 = vld [vmem:[%s7058_s5 + $0x174] ss:$8 sps:$4 sm:$0xff]  }
 0x141   : > { %2863 = vmatpush1.bf16.msra.mxu0 %v5186_v31  ;;  %v2575_v31 = vld [vmem:[%s7058_s5 + $0x180] sm:$0xff] }
 0x142   : > { %2864 = vmatprep.subr.bf16.mxu0 %v5191_v32  ;;  %v5228_v32 = vld [vmem:[%s7058_s5 + $0x170] ss:$8 sps:$4 sm:$0xff]  }
 0x145   : > { %2865 = vmatpush1.bf16.msra.mxu0 %v5189_v33 }
 0x146   : > { %2866 = vmatprep.subr.bf16.mxu0 %v5194_v34  ;;  %v4458_v34 = vcombine.high %v2575_v31, %v2575_v31 }
 0x149   : > { %2867 = vmatpush1.bf16.msra.mxu0 %v5192_v35  ;;  %v4457_v35 = vcombine.low %v2575_v31, %v2575_v31 }
 0x14a   : > { %2868 = vmatprep.subr.bf16.mxu0 %v5197_v36 }
 0x14d   : > { %2869 = vmatpush1.bf16.msra.mxu0 %v5195_v37  ;;  %v2839_v37 = vsel %vm2837_vm1, %v4457_v35, 0 }
 0x14e   : > { %2870 = vmatprep.subr.bf16.mxu0 %v5200_v38 }
 0x151   : > { %2871 = vmatpush1.bf16.msra.mxu0 %v5198_v39  ;;  %v5240_v39 = vld [vmem:[%s7060_s7 + $0x38] sm:$0xff]  }
 0x152   : > { %2872 = vmatprep.subr.bf16.mxu0 %v5203_v40  ;;  %3028 = vmatpush1.bf16.msra.mxu1 %v5240_v39  ;;  %v5241_v40 = vld [vmem:[%s7060_s7 + $0x40] sm:$0xff]  }
 0x153   : > { %3029 = vmatprep.subr.bf16.mxu1 %v5450_v46 }
 0x155   : > { %2873 = vmatpush1.bf16.msra.mxu0 %v5201_v41  ;;  %v5242_v41 = vld [vmem:[%s7062_s9] sm:$0xff]  }
 0x156   : > { %2874 = vmatprep.subr.bf16.mxu0 %v5206_v42  ;;  %3030 = vmatpush1.bf16.msra.mxu1 %v5241_v40  ;;  %v5451_v42 = vmov 0.0  }
 0x157   : > { %4575 = vmatprep.subr.bf16.mxu1 %v5451_v42 }
 0x159   : > { %2875 = vmatpush1.bf16.msra.mxu0 %v5204_v43  ;;  %v2576_v43 = vld [vmem:[%s7059_s6] sm:$0x3] }
 0x15a   : > { %2885 = vmatprep.subr.bf16.mxu0 %v5209_v44  ;;  %v2581_v44 = vrot.slane %v2576_v43, %v865_v55  ;;  %v2585_v45 = vrot.slane %v2576_v43, %v869_v57  ;;  %v6622_v57 = vld [vmem:[%s7064_s11 + $0x8] sm:$0xff]  }
 0x1ef   : > { %v2348_v62 = vpop.f32.mrb[0].mxu0  ;;  %v2512_v63 = vpop.f32.mrb[0].mxu1 }
 0x1f0   : > { %v4671_v0 = vadd.f32 %v2348_v62, %v866_v59  ;;  %v2350_v1 = vpop.f32.mrb[1].mxu0  ;;  %v2514_v2 = vpop.f32.mrb[1].mxu1  ;;  %v4673_v33 = vadd.f32 %v2512_v63, %v874_v29  ;;  %v6615_v59 = vld [vmem:[%s7064_s11] sm:$0xff]  }
 0x1f1   : > { %v4672_v3 = vadd.f32 %v2350_v1, %v870_v60  ;;  %v4674_v4 = vadd.f32 %v2514_v2, %v878_v61  ;;  %v2352_v5 = vpop.f32.mrb[2].mxu0  ;;  %v2516_v6 = vpop.f32.mrb[2].mxu1  ;;  %v5244_v60 = vld [vmem:[%s7062_s9 + $0x8] sm:$0xff]   ;;  %v3133_v61 = vld [vmem:[%s596_s15] sm:$0x1] }
 0x1f2   : > { %v2519_v7 = vmax.f32 %v4671_v0, 0.0  ;;  %v2353_v8 = vpop.f32.mrb[3].mxu0  ;;  %v2517_v9 = vpop.f32.mrb[3].mxu1  ;;  %v2521_v36 = vmax.f32 %v4673_v33, 0.0  ;;  %v3135_v62 = vpack.c.bf16 %v3133_v61, %v3133_v61  ;;  %v4461_v63 = vld [vmem:[%s7061_s8] ss:$0 sm:$0xff] }
 0x1f3   : > { %v2520_v10 = vmax.f32 %v4672_v3, 0.0  ;;  %v2522_v12 = vmax.f32 %v4674_v4, 0.0 }
 0x1f4   : > { %v2523_v16 = vpack.c.bf16 %v2519_v7, %v2519_v7  ;;  %v2525_v38 = vpack.c.bf16 %v2521_v36, %v2521_v36 }
 0x1f5   : > { %v2524_v14 = vpack.c.bf16 %v2520_v10, %v2520_v10  ;;  %v2526_v13 = vpack.c.bf16 %v2522_v12, %v2522_v12  ;;  %v4472_v12 = vld [vmem:[%s7063_s10] ss:$0 sm:$0xff] }
 0x1f7   : > { %2876 = vmatprep.mubr.bf16.mxu0 %v2524_v14 }
 0x1f8   : > { %2877 = vmatmul.mubr.bf16.vlgmr.msra.gmra.mrb[4].mxu0 %v2523_v16 }
 0x1f9   : > { %2886 = vmatpush1.bf16.msra.mxu0 %v5207_v15  ;;  %4460 = vmatprep.mubr.msk.bf16.mxu0 %vm2833_vm0, %v2526_v13 }
 0x1fa   : > { %2887 = vmatprep.subr.bf16.mxu0 %v5212_v17 }
 0x1fd   : > { %2888 = vmatpush1.bf16.msra.mxu0 %v5210_v11 }
 0x1fe   : > { %2889 = vmatprep.subr.bf16.mxu0 %v5215_v18 }
 0x201   : > { %2890 = vmatpush1.bf16.msra.mxu0 %v5213_v19 }
 0x202   : > { %2891 = vmatprep.subr.bf16.mxu0 %v5218_v20  ;;  %v3127_v20 = vand.u32 127, %v863_v53 }
 0x204   : > { %vm3128_vm5 = vcmp.ge.s32.totalorder %v3127_v20, 64  ;;  %vm3129_vm6 = vcmp.lt.s32.totalorder %v3127_v20, 96 }
 0x205   : > { %2892 = vmatpush1.bf16.msra.mxu0 %v5216_v21  ;;  %vm3130_vm7 = vmand %vm3128_vm5, %vm3129_vm6 }
 0x206   : > { %2893 = vmatprep.subr.bf16.mxu0 %v5221_v22  ;;  %v5453_v22 = vmov 1.0  }
 0x209   : > { %2894 = vmatpush1.bf16.msra.mxu0 %v5219_v23  ;;  %v6661_v23 = vsel %vm3130_vm7, 2.0, %v5453_v22 }
 0x20a   : > { %2895 = vmatprep.subr.bf16.mxu0 %v5224_v24 }
 0x20d   : > { %2896 = vmatpush1.bf16.msra.mxu0 %v5222_v25  ;;  %v6664_v25 = vsel %vm3130_vm7, -1.0, %v5451_v42 }
 0x20e   : > { %2897 = vmatprep.subr.bf16.mxu0 %v5227_v27 }
 0x211   : > { %2898 = vmatpush1.bf16.msra.mxu0 %v5225_v28  ;;  %v4480_v28 = vld [vmem:[%s599_s24] ss:$0 sm:$0xff]  ;;  %s4504_s24 = sshll.u32 %s5573_s28, 5 }
 0x212   : > { %2899 = vmatprep.subr.bf16.mxu0 %v5230_v30  ;;  %s6919_s16 = scalar_lea.hbm %s7067_s14, %s4504_s24 }
 0x215   : > { %2900 = vmatpush1.bf16.msra.mxu0 %v5228_v32 }
 0x216   : > { %4459 = vmatprep.subr.msk.bf16.mxu0 %vm2837_vm1, %v4458_v34 }
 0x219   : > { %2902 = vmatpush1.bf16.msra.mxu0 %v2839_v37 }
 0x21a   : > { %4567 = vmatprep.subr.bf16.mxu0 %v5451_v42 }
 0x21c   : > { %2918 = vmatmul.mubr.bf16.vlgmr.msra.gmra.mrb[4].mxu0 %v2525_v38 }
 0x21d   : > { %4568 = vmatpush3.bf16.msra.mxu0 %v5242_v41  ;;  %4571 = vmatprep.mubr.msk.bf16.mxu0 %vm5452_vm3, %v5451_v42 }
 0x21e   : > { %4569 = vmatprep.subr.bf16.mxu0 %v5451_v42 }
 0x221   : > { %4570 = vmatpush3.bf16.msra.mxu0 %v5244_v60 }
 0x222   : > { %4631 = vmatprep.subr.bf16.mxu0 %v5451_v42 }
 0x2ef   : > { %v2919_v46 = vpop.f32.mrb[4].mxu0 }
 0x2f0   : > { %v4675_v47 = vadd.f32 %v2919_v46, %v2581_v44  ;;  %v2921_v48 = vpop.f32.mrb[5].mxu0 }
 0x2f1   : > { %v4676_v49 = vadd.f32 %v2921_v48, %v2585_v45  ;;  %v2923_v50 = vpop.f32.mrb[6].mxu0 }
 0x2f2   : > { %v2926_v51 = vmax.f32 %v4675_v47, 0.0  ;;  %v2924_v52 = vpop.f32.mrb[7].mxu0 }
 0x2f3   : > { %v2927_v56 = vmax.f32 %v4676_v49, 0.0 }
 0x2f4   : > { %v2928_v55 = vpack.c.bf16 %v2926_v51, %v2926_v51 }
 0x2f5   : > { %v2929_v58 = vpack.c.bf16 %v2927_v56, %v2927_v56 }
 0x2f7   : > { %4471 = vmatprep.mubr.msk.bf16.mxu1 %vm3009_vm2, %v2929_v58 }
 0x2f8   : > { %3046 = vmatmul.mubr.bf16.vlgmr.msra.gmra.mrb[4].mxu1 %v2928_v55 }
 0x2f9   : > { %4576 = vmatpush3.bf16.msra.mxu1 %v6615_v59  ;;  %4579 = vmatprep.mubr.msk.bf16.mxu1 %vm5452_vm3, %v5451_v42 }
 0x2fa   : > { %4577 = vmatprep.subr.bf16.mxu1 %v5451_v42 }
 0x2fd   : > { %4578 = vmatpush3.bf16.msra.mxu1 %v6622_v57 }
 0x2fe   : > { %4583 = vmatprep.subr.bf16.mxu1 %v5451_v42 }
 0x300   : > { %4580 = vmatmul.mubr.msk.bf16.vlgmr.msra.gmra.mrb[8].mxu1 %vm3078_vm4, %v3135_v62 }
 0x301   : > { %4584 = vmatpush3.bf16.msra.mxu1 %v6615_v59  ;;  %4587 = vmatprep.mubr.msk.bf16.mxu1 %vm5452_vm3, %v5451_v42 }
 0x302   : > { %4585 = vmatprep.subr.bf16.mxu1 %v5451_v42 }
 0x305   : > { %4586 = vmatpush3.bf16.msra.mxu1 %v6622_v57 }
 0x306   : > { %4591 = vmatprep.subr.bf16.mxu1 %v5451_v42 }
 0x3cb   : > { %v3047_v0 = vpop.f32.mrb[4].mxu1 }
 0x3cc   : > { %v3048_v1 = vadd.f32 %v4461_v63, %v3047_v0  ;;  %v3049_v2 = vpop.f32.mrb[5].mxu1 }
 0x3cd   : > { %v3050_v3 = vpop.f32.mrb[6].mxu1 }
 0x3ce   : > { %v3053_v4 = vmax.f32 %v3048_v1, 0.0  ;;  %v3051_v5 = vpop.f32.mrb[7].mxu1 }
 0x3d0   : > { %v3054_v6 = vpack.c.bf16 %v3053_v4, %v3053_v4 }
 0x3d2   : > { %4572 = vmatmul.mubr.msk.bf16.vlgmr.msra.gmra.mrb[8].mxu0 %vm3078_vm4, %v3054_v6 }
 0x3d3   : > { %4632 = vmatpush3.bf16.msra.mxu0 %v6615_v59  ;;  %4635 = vmatprep.mubr.msk.bf16.mxu0 %vm5452_vm3, %v5451_v42  ;;  %v3185_v7 = vpop.f32.mrb[8].mxu1 }
 0x3d4   : > { %4633 = vmatprep.subr.bf16.mxu0 %v5451_v42  ;;  %v4581_v8 = vpop.f32.mrb[9].mxu1 }
 0x3d5   : > { %v3188_v9 = vpop.f32.mrb[10].mxu1 }
 0x3d6   : > { %v4582_v10 = vpop.f32.mrb[11].mxu1 }
 0x3d7   : > { %4634 = vmatpush3.bf16.msra.mxu0 %v6622_v57 }
 0x4a5   : > { %v3116_v14 = vpop.f32.mrb[8].mxu0 }
 0x4a6   : > { %v6657_v15 = vadd.f32 %v4472_v12, %v3116_v14  ;;  %v4573_v16 = vpop.f32.mrb[9].mxu0 }
 0x4a7   : > { %v3119_v17 = vpop.f32.mrb[10].mxu0 }
 0x4a8   : > { %v4574_v13 = vpop.f32.mrb[11].mxu0  ;;  %v3186_v11 = vadd.f32 %v3185_v7, %v6657_v15  ;;  %v3229_v40 = vrot.slane %v6657_v15, 1  ;;  %v3303_v3 = vrot.slane %v6657_v15, 2 }
 0x4aa   : > { %v4479_v18 = vmul.f32 -1.442695, %v3186_v11 }
 0x4ac   : > { %5246 = vpow2.f32 %v4479_v18 }
 0x4b6   : > { %v5247_v19 = vpop.eup %5246 }
 0x4b7   : > { %v3194_v21 = vadd.f32 1.0, %v5247_v19 }
 0x4b9   : > { %5248 = vrcp.f32 %v3194_v21 }
 0x4c3   : > { %v5249_v24 = vpop.eup %5248 }
 0x4c4   : > { %v3197_v26 = vmul.f32 %v5249_v24, %v6661_v23 }
 0x4c6   : > { %v3198_v27 = vadd.f32 %v3197_v26, %v6664_v25 }
 0x4c8   : > { %3209 = vrot.lane.b32.xlu0 %v3198_v27, %s5454_s30 }
 0x4cc   : > { %3204 = vrot.lane.b32.xlu0 %v4480_v28, %s5455_s27  ;;  %v3377_v28 = vrot.slane %v6657_v15, 3 }
 0x53a   : > { %v3210_v29 = vpop.permute.xlu0 %3209 }
 0x53b   : > { %v3212_v30 = vmul.f32 %v3210_v29, %v3198_v27 }
 0x53d   : > { %3214 = vrot.lane.b32.xlu1 %v3212_v30, %s5455_s27 }
 0x53e   : > { %v3205_v31 = vpop.permute.xlu0 %3204 }
 0x53f   : > { %v3207_v32 = vmul.f32 %v3205_v31, %v3198_v27 }
 0x5af   : > { %v3215_v33 = vpop.permute.xlu1 %3214 }
 0x5b0   : > { %v3217_v34 = vadd.f32 %v3215_v33, %v3207_v32 }
 0x5b2   : > { %5250 = vtanh.f32 %v3217_v34 }
 0x5bc   : > { %v5251_v35 = vpop.eup %5250 }
 0x5bd   : > { %3220 = vrot.lane.b32.xlu1 %v5251_v35, %s5454_s30 }
 0x62f   : > { %v3221_v36 = vpop.permute.xlu1 %3220 }
 0x630   : > { %v6676_v37 = vmul.f32 %v3221_v36, %v3198_v27 }
 0x632   : > { %v3224_v38 = vpack.c.bf16 %v6676_v37, %v6676_v37 }
 0x634   : > { %3226 = vrot.lane.b32.xlu0 %v3224_v38, %s5455_s27 }
 0x6a6   : > { %v3227_v39 = vpop.permute.xlu0 %3226 }
 0x6a7   : > { %4588 = vmatmul.mubr.msk.bf16.vlgmr.msra.gmra.mrb[12].mxu1 %vm3078_vm4, %v3227_v39 }
 0x6a8   : > { %4592 = vmatpush3.bf16.msra.mxu1 %v6615_v59  ;;  %4595 = vmatprep.mubr.msk.bf16.mxu1 %vm5452_vm3, %v5451_v42 }
 0x6a9   : > { %4593 = vmatprep.subr.bf16.mxu1 %v5451_v42 }
 0x6ac   : > { %4594 = vmatpush3.bf16.msra.mxu1 %v6622_v57 }
 0x6ad   : > { %4599 = vmatprep.subr.bf16.mxu1 %v5451_v42 }
 0x77a   : > { %v3268_v41 = vpop.f32.mrb[12].mxu1 }
 0x77b   : > { %v3269_v43 = vadd.f32 %v3268_v41, %v3229_v40  ;;  %v4589_v44 = vpop.f32.mrb[13].mxu1 }
 0x77c   : > { %v3271_v45 = vpop.f32.mrb[14].mxu1 }
 0x77d   : > { %v4482_v46 = vmul.f32 -1.442695, %v3269_v43  ;;  %v4590_v47 = vpop.f32.mrb[15].mxu1 }
 0x77f   : > { %5252 = vpow2.f32 %v4482_v46 }
 0x789   : > { %v5253_v48 = vpop.eup %5252 }
 0x78a   : > { %v3277_v49 = vadd.f32 1.0, %v5253_v48 }
 0x78c   : > { %5254 = vrcp.f32 %v3277_v49 }
 0x796   : > { %v5255_v50 = vpop.eup %5254 }
 0x797   : > { %v3280_v51 = vmul.f32 %v5255_v50, %v6661_v23 }
 0x799   : > { %v3281_v52 = vadd.f32 %v3280_v51, %v6664_v25 }
 0x79b   : > { %3284 = vrot.lane.b32.xlu1 %v3281_v52, %s5454_s30  ;;  %v3282_v55 = vmul.f32 %v3281_v52, %v3217_v34 }
 0x80d   : > { %v3285_v56 = vpop.permute.xlu1 %3284 }
 0x80e   : > { %v3287_v58 = vmul.f32 %v3285_v56, %v3281_v52 }
 0x810   : > { %3289 = vrot.lane.b32.xlu0 %v3287_v58, %s5455_s27 }
 0x882   : > { %v3290_v60 = vpop.permute.xlu0 %3289 }
 0x883   : > { %v3292_v61 = vadd.f32 %v3290_v60, %v3282_v55 }
 0x885   : > { %5256 = vtanh.f32 %v3292_v61 }
 0x88f   : > { %v5257_v62 = vpop.eup %5256 }
 0x890   : > { %3295 = vrot.lane.b32.xlu1 %v5257_v62, %s5454_s30 }
 0x902   : > { %v3296_v63 = vpop.permute.xlu1 %3295 }
 0x903   : > { %v6694_v0 = vmul.f32 %v3296_v63, %v3281_v52  ;;  %v3451_v52 = vrot.slane %v6657_v15, 4 }
 0x905   : > { %v3299_v1 = vpack.c.bf16 %v6694_v0, %v6694_v0 }
 0x907   : > { %3301 = vrot.lane.b32.xlu0 %v3299_v1, %s5455_s27 }
 0x979   : > { %v3302_v2 = vpop.permute.xlu0 %3301 }
 0x97a   : > { %4596 = vmatmul.mubr.msk.bf16.vlgmr.msra.gmra.mrb[16].mxu1 %vm3078_vm4, %v3302_v2 }
 0x97b   : > { %4600 = vmatpush3.bf16.msra.mxu1 %v6615_v59  ;;  %4603 = vmatprep.mubr.msk.bf16.mxu1 %vm5452_vm3, %v5451_v42 }
 0x97c   : > { %4601 = vmatprep.subr.bf16.mxu1 %v5451_v42 }
 0x97f   : > { %4602 = vmatpush3.bf16.msra.mxu1 %v6622_v57 }
 0x980   : > { %4607 = vmatprep.subr.bf16.mxu1 %v5451_v42 }
 0xa4d   : > { %v3342_v4 = vpop.f32.mrb[16].mxu1 }
 0xa4e   : > { %v3343_v5 = vadd.f32 %v3342_v4, %v3303_v3  ;;  %v4597_v6 = vpop.f32.mrb[17].mxu1 }
 0xa4f   : > { %v3345_v7 = vpop.f32.mrb[18].mxu1 }
 0xa50   : > { %v4484_v8 = vmul.f32 -1.442695, %v3343_v5  ;;  %v4598_v9 = vpop.f32.mrb[19].mxu1 }
 0xa52   : > { %5258 = vpow2.f32 %v4484_v8 }
 0xa5c   : > { %v5259_v10 = vpop.eup %5258 }
 0xa5d   : > { %v3351_v12 = vadd.f32 1.0, %v5259_v10 }
 0xa5f   : > { %5260 = vrcp.f32 %v3351_v12 }
 0xa69   : > { %v5261_v14 = vpop.eup %5260 }
 0xa6a   : > { %v3354_v16 = vmul.f32 %v5261_v14, %v6661_v23 }
 0xa6c   : > { %v3355_v17 = vadd.f32 %v3354_v16, %v6664_v25 }
 0xa6e   : > { %3358 = vrot.lane.b32.xlu1 %v3355_v17, %s5454_s30  ;;  %v3356_v18 = vmul.f32 %v3355_v17, %v3292_v61 }
 0xae0   : > { %v3359_v13 = vpop.permute.xlu1 %3358 }
 0xae1   : > { %v3361_v11 = vmul.f32 %v3359_v13, %v3355_v17  ;;  %v3525_v13 = vrot.slane %v6657_v15, 5 }
 0xae3   : > { %3363 = vrot.lane.b32.xlu0 %v3361_v11, %s5455_s27 }
 0xb55   : > { %v3364_v19 = vpop.permute.xlu0 %3363 }
 0xb56   : > { %v3366_v20 = vadd.f32 %v3364_v19, %v3356_v18 }
 0xb58   : > { %5262 = vtanh.f32 %v3366_v20 }
 0xb62   : > { %v5263_v21 = vpop.eup %5262 }
 0xb63   : > { %3369 = vrot.lane.b32.xlu1 %v5263_v21, %s5454_s30 }
 0xbd5   : > { %v3370_v22 = vpop.permute.xlu1 %3369 }
 0xbd6   : > { %v6712_v24 = vmul.f32 %v3370_v22, %v3355_v17 }
 0xbd8   : > { %v3373_v26 = vpack.c.bf16 %v6712_v24, %v6712_v24 }
 0xbda   : > { %3375 = vrot.lane.b32.xlu0 %v3373_v26, %s5455_s27 }
 0xc4c   : > { %v3376_v27 = vpop.permute.xlu0 %3375 }
 0xc4d   : > { %4604 = vmatmul.mubr.msk.bf16.vlgmr.msra.gmra.mrb[20].mxu1 %vm3078_vm4, %v3376_v27 }
 0xc4e   : > { %4608 = vmatpush3.bf16.msra.mxu1 %v6615_v59  ;;  %4611 = vmatprep.mubr.msk.bf16.mxu1 %vm5452_vm3, %v5451_v42 }
 0xc4f   : > { %4609 = vmatprep.subr.bf16.mxu1 %v5451_v42 }
 0xc52   : > { %4610 = vmatpush3.bf16.msra.mxu1 %v6622_v57 }
 0xc53   : > { %4615 = vmatprep.subr.bf16.mxu1 %v5451_v42 }
 0xd20   : > { %v3416_v29 = vpop.f32.mrb[20].mxu1 }
 0xd21   : > { %v3417_v30 = vadd.f32 %v3416_v29, %v3377_v28  ;;  %v4605_v31 = vpop.f32.mrb[21].mxu1 }
 0xd22   : > { %v3419_v32 = vpop.f32.mrb[22].mxu1 }
 0xd23   : > { %v4486_v33 = vmul.f32 -1.442695, %v3417_v30  ;;  %v4606_v34 = vpop.f32.mrb[23].mxu1 }
 0xd25   : > { %5264 = vpow2.f32 %v4486_v33 }
 0xd2f   : > { %v5265_v35 = vpop.eup %5264 }
 0xd30   : > { %v3425_v36 = vadd.f32 1.0, %v5265_v35 }
 0xd32   : > { %5266 = vrcp.f32 %v3425_v36 }
 0xd3c   : > { %v5267_v38 = vpop.eup %5266 }
 0xd3d   : > { %v3428_v39 = vmul.f32 %v5267_v38, %v6661_v23 }
 0xd3f   : > { %v3429_v40 = vadd.f32 %v3428_v39, %v6664_v25  ;;  %v3599_v39 = vrot.slane %v6657_v15, 6 }
 0xd41   : > { %3432 = vrot.lane.b32.xlu1 %v3429_v40, %s5454_s30  ;;  %v3430_v44 = vmul.f32 %v3429_v40, %v3366_v20 }
 0xdb3   : > { %v3433_v41 = vpop.permute.xlu1 %3432 }
 0xdb4   : > { %v3435_v43 = vmul.f32 %v3433_v41, %v3429_v40 }
 0xdb6   : > { %3437 = vrot.lane.b32.xlu0 %v3435_v43, %s5455_s27 }
 0xe28   : > { %v3438_v45 = vpop.permute.xlu0 %3437 }
 0xe29   : > { %v3440_v46 = vadd.f32 %v3438_v45, %v3430_v44 }
 0xe2b   : > { %5268 = vtanh.f32 %v3440_v46 }
 0xe35   : > { %v5269_v47 = vpop.eup %5268 }
 0xe36   : > { %3443 = vrot.lane.b32.xlu1 %v5269_v47, %s5454_s30 }
 0xea8   : > { %v3444_v48 = vpop.permute.xlu1 %3443 }
 0xea9   : > { %v6730_v49 = vmul.f32 %v3444_v48, %v3429_v40 }
 0xeab   : > { %v3447_v50 = vpack.c.bf16 %v6730_v49, %v6730_v49 }
 0xead   : > { %3449 = vrot.lane.b32.xlu0 %v3447_v50, %s5455_s27 }
 0xf1f   : > { %v3450_v51 = vpop.permute.xlu0 %3449 }
 0xf20   : > { %4612 = vmatmul.mubr.msk.bf16.vlgmr.msra.gmra.mrb[24].mxu1 %vm3078_vm4, %v3450_v51 }
 0xf21   : > { %4616 = vmatpush3.bf16.msra.mxu1 %v6615_v59  ;;  %4619 = vmatprep.mubr.msk.bf16.mxu1 %vm5452_vm3, %v5451_v42 }
 0xf22   : > { %4617 = vmatprep.subr.bf16.mxu1 %v5451_v42 }
 0xf25   : > { %4618 = vmatpush3.bf16.msra.mxu1 %v6622_v57 }
 0xf26   : > { %4623 = vmatprep.subr.bf16.mxu1 %v5451_v42 }
 0xff3   : > { %v3490_v56 = vpop.f32.mrb[24].mxu1 }
 0xff4   : > { %v3491_v58 = vadd.f32 %v3490_v56, %v3451_v52  ;;  %v4613_v55 = vpop.f32.mrb[25].mxu1 }
 0xff5   : > { %v3493_v60 = vpop.f32.mrb[26].mxu1 }
 0xff6   : > { %v4488_v61 = vmul.f32 -1.442695, %v3491_v58  ;;  %v4614_v62 = vpop.f32.mrb[27].mxu1 }
 0xff8   : > { %5270 = vpow2.f32 %v4488_v61 }
0x1002   : > { %v5271_v63 = vpop.eup %5270 }
0x1003   : > { %v3499_v1 = vadd.f32 1.0, %v5271_v63 }
0x1005   : > { %5272 = vrcp.f32 %v3499_v1 }
0x100f   : > { %v5273_v2 = vpop.eup %5272 }
0x1010   : > { %v3502_v3 = vmul.f32 %v5273_v2, %v6661_v23 }
0x1012   : > { %v3503_v4 = vadd.f32 %v3502_v3, %v6664_v25 }
0x1014   : > { %3506 = vrot.lane.b32.xlu1 %v3503_v4, %s5454_s30  ;;  %v3504_v7 = vmul.f32 %v3503_v4, %v3440_v46 }
0x1086   : > { %v3507_v5 = vpop.permute.xlu1 %3506 }
0x1087   : > { %v3509_v6 = vmul.f32 %v3507_v5, %v3503_v4 }
0x1089   : > { %3511 = vrot.lane.b32.xlu0 %v3509_v6, %s5455_s27 }
0x10fb   : > { %v3512_v8 = vpop.permute.xlu0 %3511 }
0x10fc   : > { %v3514_v9 = vadd.f32 %v3512_v8, %v3504_v7 }
0x10fe   : > { %5274 = vtanh.f32 %v3514_v9 }
0x1108   : > { %v5275_v10 = vpop.eup %5274 }
0x1109   : > { %3517 = vrot.lane.b32.xlu1 %v5275_v10, %s5454_s30 }
0x117b   : > { %v3518_v12 = vpop.permute.xlu1 %3517 }
0x117c   : > { %v6748_v14 = vmul.f32 %v3518_v12, %v3503_v4  ;;  %v3673_v4 = vrot.slane %v6657_v15, 7 }
0x117e   : > { %v3521_v16 = vpack.c.bf16 %v6748_v14, %v6748_v14 }
0x1180   : > { %3523 = vrot.lane.b32.xlu0 %v3521_v16, %s5455_s27 }
0x11f2   : > { %v3524_v17 = vpop.permute.xlu0 %3523 }
0x11f3   : > { %4620 = vmatmul.mubr.msk.bf16.vlgmr.msra.gmra.mrb[28].mxu1 %vm3078_vm4, %v3524_v17 }
0x11f4   : > { %4624 = vmatpush3.bf16.msra.mxu1 %v6615_v59  ;;  %4627 = vmatprep.mubr.msk.bf16.mxu1 %vm5452_vm3, %v5451_v42 }
0x11f5   : > { %4625 = vmatprep.subr.bf16.mxu1 %v5451_v42 }
0x11f8   : > { %4626 = vmatpush3.bf16.msra.mxu1 %v6622_v57 }
0x12c6   : > { %v3564_v11 = vpop.f32.mrb[28].mxu1 }
0x12c7   : > { %v3565_v18 = vadd.f32 %v3564_v11, %v3525_v13  ;;  %v4621_v19 = vpop.f32.mrb[29].mxu1 }
0x12c8   : > { %v3567_v20 = vpop.f32.mrb[30].mxu1 }
0x12c9   : > { %v4490_v21 = vmul.f32 -1.442695, %v3565_v18  ;;  %v4622_v22 = vpop.f32.mrb[31].mxu1  ;;  %v3828_v20 = vld [vmem:[%s7065_s12 + $0x98] sm:$0xff] }
0x12cb   : > { %5276 = vpow2.f32 %v4490_v21 }
0x12d5   : > { %v5277_v26 = vpop.eup %5276 }
0x12d6   : > { %v3573_v27 = vadd.f32 1.0, %v5277_v26  ;;  %v3811_v26 = vld [vmem:[%s7065_s12 + $0x10] sm:$0xff] }
0x12d8   : > { %5278 = vrcp.f32 %v3573_v27  ;;  %v3812_v27 = vld [vmem:[%s7065_s12 + $0x18] sm:$0xff] }
0x12e2   : > { %v5279_v59 = vpop.eup %5278 }
0x12e3   : > { %v3576_v28 = vmul.f32 %v5279_v59, %v6661_v23  ;;  %v3829_v59 = vld [vmem:[%s7065_s12 + $0xa0] sm:$0xff] }
0x12e5   : > { %v3577_v29 = vadd.f32 %v3576_v28, %v6664_v25  ;;  %v3830_v28 = vld [vmem:[%s7065_s12 + $0xa8] sm:$0xff] }
0x12e7   : > { %3580 = vrot.lane.b32.xlu1 %v3577_v29, %s5454_s30  ;;  %v3578_v30 = vmul.f32 %v3577_v29, %v3514_v9 }
0x1359   : > { %v3581_v42 = vpop.permute.xlu1 %3580 }
0x135a   : > { %v3583_v57 = vmul.f32 %v3581_v42, %v3577_v29  ;;  %v4647_v42 = vpack.c.bf16 %v3830_v28, %v3829_v59 }
0x135c   : > { %3585 = vrot.lane.b32.xlu0 %v3583_v57, %s5455_s27  ;;  %v3813_v57 = vld [vmem:[%s7065_s12 + $0x20] sm:$0xff] }
0x13ce   : > { %v3586_v31 = vpop.permute.xlu0 %3585 }
0x13cf   : > { %v3588_v32 = vadd.f32 %v3586_v31, %v3578_v30  ;;  %v3814_v30 = vld [vmem:[%s7065_s12 + $0x28] sm:$0xff]  ;;  %v3831_v31 = vld [vmem:[%s7065_s12 + $0xb0] sm:$0xff] }
0x13d1   : > { %5280 = vtanh.f32 %v3588_v32 }
0x13db   : > { %v5281_v33 = vpop.eup %5280 }
0x13dc   : > { %3591 = vrot.lane.b32.xlu1 %v5281_v33, %s5454_s30  ;;  %v4649_v33 = vpack.c.bf16 %v3814_v30, %v3813_v57 }
0x144e   : > { %v3592_v34 = vpop.permute.xlu1 %3591 }
0x144f   : > { %v3594_v35 = vmul.f32 %v3592_v34, %v3577_v29  ;;  %v4645_v29 = vpack.c.bf16 %v3812_v27, %v3811_v26 }
0x1451   : > { %v3595_v36 = vpack.c.bf16 %v3594_v35, %v3594_v35 }
0x1453   : > { %3597 = vrot.lane.b32.xlu0 %v3595_v36, %s5455_s27  ;;  %v3816_v36 = vld [vmem:[%s7065_s12 + $0x38] sm:$0xff] }
0x14c5   : > { %v3598_v38 = vpop.permute.xlu0 %3597 }
0x14c6   : > { %4628 = vmatmul.mubr.msk.bf16.vlgmr.msra.gmra.mrb[32].mxu1 %vm3078_vm4, %v3598_v38  ;;  %v3833_v38 = vld [vmem:[%s7065_s12 + $0xc0] sm:$0xff] }
0x1599   : > { %v3638_v40 = vpop.f32.mrb[32].mxu1 }
0x159a   : > { %v3639_v41 = vadd.f32 %v3638_v40, %v3599_v39  ;;  %v4629_v43 = vpop.f32.mrb[33].mxu1  ;;  %v3834_v39 = vld [vmem:[%s7065_s12 + $0xc8] sm:$0xff] }
0x159b   : > { %v3641_v44 = vpop.f32.mrb[34].mxu1  ;;  %v3817_v43 = vld [vmem:[%s7065_s12 + $0x40] sm:$0xff] }
0x159c   : > { %v4492_v45 = vmul.f32 -1.442695, %v3639_v41  ;;  %v4630_v46 = vpop.f32.mrb[35].mxu1  ;;  %v4655_v41 = vpack.c.bf16 %v3834_v39, %v3833_v38  ;;  %v3818_v44 = vld [vmem:[%s7065_s12 + $0x48] sm:$0xff] }
0x159d   : > { %v3836_v46 = vld [vmem:[%s7065_s12 + $0xd8] sm:$0xff] }
0x159e   : > { %5282 = vpow2.f32 %v4492_v45  ;;  %v3835_v45 = vld [vmem:[%s7065_s12 + $0xd0] sm:$0xff] }
0x15a8   : > { %v5283_v47 = vpop.eup %5282 }
0x15a9   : > { %v3647_v48 = vadd.f32 1.0, %v5283_v47  ;;  %v4657_v47 = vpack.c.bf16 %v3818_v44, %v3817_v43 }
0x15ab   : > { %5284 = vrcp.f32 %v3647_v48  ;;  %v4659_v48 = vpack.c.bf16 %v3836_v46, %v3835_v45 }
0x15b5   : > { %v5285_v50 = vpop.eup %5284 }
0x15b6   : > { %v3650_v51 = vmul.f32 %v5285_v50, %v6661_v23  ;;  %v3819_v50 = vld [vmem:[%s7065_s12 + $0x50] sm:$0xff] }
0x15b8   : > { %v3651_v52 = vadd.f32 %v3650_v51, %v6664_v25  ;;  %v3820_v51 = vld [vmem:[%s7065_s12 + $0x58] sm:$0xff] }
0x15ba   : > { %3654 = vrot.lane.b32.xlu1 %v3651_v52, %s5454_s30  ;;  %v3652_v55 = vmul.f32 %v3651_v52, %v3588_v32  ;;  %v3832_v32 = vld [vmem:[%s7065_s12 + $0xb8] sm:$0xff] }
0x15bb   : > { %v4651_v34 = vpack.c.bf16 %v3832_v32, %v3831_v31 }
0x162c   : > { %v3655_v56 = vpop.permute.xlu1 %3654 }
0x162d   : > { %v3657_v58 = vmul.f32 %v3655_v56, %v3651_v52  ;;  %v3838_v56 = vld [vmem:[%s7065_s12 + $0xe8] sm:$0xff] }
0x162f   : > { %3659 = vrot.lane.b32.xlu0 %v3657_v58, %s5455_s27  ;;  %v4661_v58 = vpack.c.bf16 %v3820_v51, %v3819_v50 }
0x16a1   : > { %v3660_v60 = vpop.permute.xlu0 %3659 }
0x16a2   : > { %v6772_v61 = vadd.f32 %v3660_v60, %v3652_v55  ;;  %v3821_v60 = vld [vmem:[%s7065_s12 + $0x60] sm:$0xff] }
0x16a4   : > { %5286 = vtanh.f32 %v6772_v61 }
0x16ae   : > { %v5287_v62 = vpop.eup %5286 }
0x16af   : > { %3665 = vrot.lane.b32.xlu1 %v5287_v62, %s5454_s30  ;;  %v3822_v62 = vld [vmem:[%s7065_s12 + $0x68] sm:$0xff] }
0x1721   : > { %v3666_v63 = vpop.permute.xlu1 %3665 }
0x1722   : > { %v3668_v1 = vmul.f32 %v3666_v63, %v3651_v52  ;;  %v3837_v52 = vld [vmem:[%s7065_s12 + $0xe0] sm:$0xff]  ;;  %v4665_v63 = vpack.c.bf16 %v3822_v62, %v3821_v60 }
0x1723   : > { %v4663_v55 = vpack.c.bf16 %v3838_v56, %v3837_v52 }
0x1724   : > { %v3669_v2 = vpack.c.bf16 %v3668_v1, %v3668_v1 }
0x1726   : > { %3671 = vrot.lane.b32.xlu0 %v3669_v2, %s5455_s27 }
0x1798   : > { %v3672_v3 = vpop.permute.xlu0 %3671 }
0x1799   : > { %4636 = vmatmul.mubr.msk.bf16.vlgmr.msra.gmra.mrb[12].mxu0 %vm3078_vm4, %v3672_v3 }
0x186c   : > { %v3712_v5 = vpop.f32.mrb[12].mxu0 }
0x186d   : > { %v3713_v6 = vadd.f32 %v3712_v5, %v3673_v4  ;;  %v4637_v7 = vpop.f32.mrb[13].mxu0  ;;  %v3839_v4 = vld [vmem:[%s7065_s12 + $0xf0] sm:$0xff]  ;;  %v3840_v5 = vld [vmem:[%s7065_s12 + $0xf8] sm:$0xff] }
0x186e   : > { %v3715_v8 = vpop.f32.mrb[14].mxu0  ;;  %v3823_v7 = vld [vmem:[%s7065_s12 + $0x70] sm:$0xff] }
0x186f   : > { %v4494_v9 = vmul.f32 -1.442695, %v3713_v6  ;;  %v4638_v10 = vpop.f32.mrb[15].mxu0  ;;  %v4667_v6 = vpack.c.bf16 %v3840_v5, %v3839_v4  ;;  %v3824_v8 = vld [vmem:[%s7065_s12 + $0x78] sm:$0xff] }
0x1871   : > { %5288 = vpow2.f32 %v4494_v9 }
0x187b   : > { %v5289_v12 = vpop.eup %5288 }
0x187c   : > { %v3721_v16 = vadd.f32 1.0, %v5289_v12 }
0x187e   : > { %5290 = vrcp.f32 %v3721_v16 }
0x1888   : > { %v5291_v17 = vpop.eup %5290 }
0x1889   : > { %v3724_v13 = vmul.f32 %v5291_v17, %v6661_v23  ;;  %v3825_v23 = vld [vmem:[%s7065_s12 + $0x80] sm:$0xff] }
0x188b   : > { %v6781_v11 = vadd.f32 %v3724_v13, %v6664_v25  ;;  %v3826_v25 = vld [vmem:[%s7065_s12 + $0x88] sm:$0xff]  ;;  %v5457_v13 = vmov 1966171168  }
0x188c   : > { %v4639_v19 = vpack.c.bf16 %v3826_v25, %v3825_v23 }
0x188d   : > { %3728 = vrot.lane.b32.xlu1 %v6781_v11, %s5454_s30 }
0x188e   : > { %4640 = vmatprep.subr.bf16.mxu1 %v4639_v19 }
0x1891   : > { %3771 = vrot.lane.b32.xlu1 %v3594_v35, %s5454_s30  ;;  %v3815_v35 = vld [vmem:[%s7065_s12 + $0x30] sm:$0xff] }
0x1892   : > { %v4653_v40 = vpack.c.bf16 %v3816_v36, %v3815_v35 }
0x1895   : > { %3759 = vrot.lane.b32.xlu1 %v6694_v0, %s5454_s30  ;;  %v3809_v0 = vld [vmem:[%s7065_s12] sm:$0xff] }
0x18ff   : > { %v3729_v15 = vpop.permute.xlu1 %3728 }
0x1900   : > { %v3731_v18 = vmul.f32 %v3729_v15, %v6781_v11  ;;  %v3790_v15 = vunpack.c.l.s4 %v5457_v13 }
0x1902   : > { %3733 = vrot.lane.b32.xlu0 %v3731_v18, %s5455_s27  ;;  %v3791_v19 = vunpack.c.0.s8 %v3790_v15 }
0x1903   : > { %v3772_v12 = vpop.permute.xlu1 %3771 }
0x1906   : > { %3767 = vrot.lane.b32.xlu0 %v6748_v14, %s5455_s27  ;;  %v3810_v14 = vld [vmem:[%s7065_s12 + $0x8] sm:$0xff] }
0x1907   : > { %v4641_v21 = vpack.c.bf16 %v3810_v14, %v3809_v0  ;;  %v3760_v17 = vpop.permute.xlu1 %3759 }
0x1909   : > { %4642 = vmatpush3.bf16.msra.mxu1 %v4641_v21 }
0x190a   : > { %3755 = vrot.lane.b32.xlu0 %v6676_v37, %s5455_s27  ;;  %v3827_v37 = vld [vmem:[%s7065_s12 + $0x90] sm:$0xff] }
0x190b   : > { %v4643_v22 = vpack.c.bf16 %v3828_v20, %v3827_v37 }
0x190d   : > { %4644 = vmatprep.subr.bf16.mxu1 %v4643_v22  ;;  %v3794_v22 = vsub.s32 %v3791_v19, %v6531_v54 }
0x190e   : > { %3775 = vrot.lane.b32.xlu0 %v3668_v1, %s5456_s20  ;;  %4646 = vmatpush3.bf16.msra.mxu1 %v4645_v29  ;;  %v3726_v1 = vmul.f32 %v6781_v11, %v6772_v61  ;;  %v4669_v61 = vpack.c.bf16 %v3824_v8, %v3823_v7 }
0x190f   : > { %4648 = vmatprep.subr.bf16.mxu1 %v4647_v42 }
0x1912   : > { %4650 = vmatpush3.bf16.msra.mxu1 %v4649_v33 }
0x1913   : > { %4652 = vmatprep.subr.bf16.mxu1 %v4651_v34 }
0x1916   : > { %4654 = vmatpush3.bf16.msra.mxu1 %v4653_v40 }
0x1917   : > { %4656 = vmatprep.subr.bf16.mxu1 %v4655_v41 }
0x191a   : > { %4658 = vmatpush3.bf16.msra.mxu1 %v4657_v47 }
0x191b   : > { %4660 = vmatprep.subr.bf16.mxu1 %v4659_v48 }
0x191e   : > { %4662 = vmatpush3.bf16.msra.mxu1 %v4661_v58 }
0x191f   : > { %4664 = vmatprep.subr.bf16.mxu1 %v4663_v55 }
0x1922   : > { %4666 = vmatpush3.bf16.msra.mxu1 %v4665_v63 }
0x1923   : > { %4668 = vmatprep.subr.bf16.mxu1 %v4667_v6 }
0x1926   : > { %4670 = vmatpush3.bf16.msra.mxu1 %v4669_v61 }
0x1974   : > { %v3734_v2 = vpop.permute.xlu0 %3733 }
0x1975   : > { %v3736_v3 = vadd.f32 %v3734_v2, %v3726_v1 }
0x1977   : > { %5292 = vtanh.f32 %v3736_v3 }
0x1978   : > { %v3768_v10 = vpop.permute.xlu0 %3767 }
0x1979   : > { %v3783_v25 = vsel %vm3078_vm4, %v3768_v10, %v3772_v12 }
0x197c   : > { %v3756_v16 = vpop.permute.xlu0 %3755 }
0x197d   : > { %v3778_v37 = vsel %vm3078_vm4, %v3756_v16, %v3760_v17 }
0x1980   : > { %v3776_v18 = vpop.permute.xlu0 %3775 }
0x1981   : > { %v5293_v9 = vpop.eup %5292  ;;  %v3784_v14 = vsel %vm3779_vm8, %v3783_v25, %v3776_v18 }
0x1982   : > { %3739 = vrot.lane.b32.xlu1 %v5293_v9, %s5454_s30  ;;  %s6901_s30 = sand.u32 1, %s5440_s25  }
0x1983   : > { %s3915_s15 = scalar_lea.sflag [#allocation3], %s6901_s30 }
0x1986   : > { %3763 = vrot.lane.b32.xlu1 %v6712_v24, %s5456_s20 }
0x198a   : > { %3750 = vrot.lane.b32.xlu1 %v3736_v3, %s5456_s20  ;;  %s588_s20 = scalar_lea.vmem [#allocation7], %s6901_s30 }
0x19f4   : > { %v3740_v23 = vpop.permute.xlu1 %3739 }
0x19f5   : > { %v3742_v0 = vmul.f32 %v3740_v23, %v6781_v11 }
0x19f7   : > { %3744 = vrot.lane.b32.xlu0 %v3742_v0, %s5455_s27  ;;  %v3785_v24 = vsel %vm3781_vm9, %v3784_v14, %v3742_v0  ;;  %s4142_s27 = sshll.u32 %s6901_s30, 1 }
0x19f8   : > { %3906 = vmatprep.mubr.f32.mxu1 %v3785_v24  ;;  %v3764_v20 = vpop.permute.xlu1 %3763  ;;  %s570_s21 = scalar_lea.vmem [#allocation2], %s4142_s27  ;;  %s5300_s27 = scalar_lea.vmem %s5299_s0, 64 }
0x19f9   : > { %v3780_v21 = vsel %vm3779_vm8, %v3778_v37, %v3764_v20  ;;  %s3941_s18 = sshll.u32 %s570_s21, 4  ;;  %s3942_s18 = int_to_ptr.vmem [resolvable:$true] %s3941_s18 }
0x19fa   : > { %v3782_v11 = vsel %vm3781_vm9, %v3780_v21, %v6730_v49  ;;  %s5294_s19 = scalar_lea.vmem %s3942_s18, 32  ;;  %p5301_p0 = scmp.lt.s32.totalorder %s3942_s18, %s5299_s0 }
0x19fb   : > { %v3788_v26 = vcombine.low %v3782_v11, %v3785_v24  ;;  %3907 = vmatmul.mubr.f32.vlgmr.msra.gmra.mrb[36].mxu1 %v3782_v11  ;;  %p5295_p11 = scmp.ne.s32.totalorder %s3942_s18, %s5294_s19  ;;  %p5302_p1 = scmp.lt.s32.totalorder %s5300_s27, %s5294_s19 }
0x19fc   : > { %v3751_v27 = vpop.permute.xlu1 %3750 }
0x19fd   : > { %v3795_v59 = vrot.slane %v3788_v26, %v3794_v22  ;;  %3753 = vst.msk [vmem:[%s588_s20] sm:$0x1] %vm3747_vm10, %v3751_v27  ;;  %p5296_p12 = pnand %p5295_p11, %p5592_p5  ;;  %p5303_p2 = por %p5302_p1, %p5301_p0 }
0x19ff   : > { %v3802_v28 = vrot.slane %v3795_v59, %v3794_v22  ;;  %p5297_p13 = pneg %p5296_p12 }
0x1a01   : > { %3808 = vst.msk [vmem:[%s570_s21] sm:$0x3] %vm3806_vm11, %v3802_v28  ;;  %p5304_p3 = pnand %p5303_p2, %p5297_p13 }
0x1a03   : > { %5307 = shalt.err (!%p5304_p3)
}
0x1a04   : > { %s5308_s21 = scalar_lea.hbm %s6919_s16, 32  ;;  %s5312_s26 = scalar_lea.hbm %s7067_s14, 64 }
0x1a05   : > { %p5309_p4 = scmp.ne.s32.totalorder %s6919_s16, %s5308_s21  ;;  %p5313_p9 = scmp.lt.u32.totalorder %s6919_s16, %s7067_s14 }
0x1a06   : > { %p5314_p10 = scmp.lt.u32.totalorder %s5312_s26, %s5308_s21  ;;  %p5316_p12 = scmp.lt.u32.totalorder %s5308_s21, %s6919_s16 }
0x1a07   : > { %p5310_p7 = pnand %p5309_p4, %p5592_p5 }
0x1a08   : > { %p5315_p11 = por %p5314_p10, %p5313_p9 }
0x1a09   : > { %p5311_p8 = pneg %p5310_p7 }
0x1a0a   : > { %p5317_p13 = por %p5316_p12, %p5315_p11 }
0x1a0c   : > { %p5318_p0 = pnand %p5317_p13, %p5311_p8 }
0x1a0e   : > { %5321 = shalt.err (!%p5318_p0)
}
0x1a0f   : > { %4705 = dma.vmem_to_hbm [thread:$0]  (%p5592_p5), %s3942_s18, 32, %s6919_s16, %s3915_s15  }
0x1a10   : > { %s6943_s24 = scalar_lea.hbm %s7070_s17, %s6913_s23  ;;  %s3980_s29 = sshll.u32 %s588_s20, 4  ;;  %s3981_s29 = int_to_ptr.vmem [resolvable:$true] %s3980_s29 }
0x1a11   : > { %s3928_s21 = scalar_lea.sflag [#allocation8], %s6901_s30  ;;  %s5322_s26 = scalar_lea.vmem %s3981_s29, 16 }
0x1a12   : > { %p5323_p1 = scmp.ne.s32.totalorder %s3981_s29, %s5322_s26  ;;  %s5459_s22 = smov [#allocation7]  }
0x1a13   : > { %s5326_s0 = sshll.u32 %s5459_s22, 4  ;;  %s5327_s0 = int_to_ptr.vmem [resolvable:$false] %s5326_s0 }
0x1a14   : > { %p5324_p2 = pnand %p5323_p1, %p5592_p5  ;;  %s5328_s2 = scalar_lea.vmem %s5327_s0, 32 }
0x1a15   : > { %p5329_p4 = scmp.lt.s32.totalorder %s3981_s29, %s5327_s0  ;;  %p5330_p7 = scmp.lt.s32.totalorder %s5328_s2, %s5322_s26 }
0x1a16   : > { %p5325_p3 = pneg %p5324_p2 }
0x1a17   : > { %p5331_p8 = por %p5330_p7, %p5329_p4 }
0x1a19   : > { %p5332_p9 = pnand %p5331_p8, %p5325_p3 }
0x1a1b   : > { %5335 = shalt.err (!%p5332_p9)
}
0x1a1c   : > { %s5336_s20 = scalar_lea.hbm %s6943_s24, 16  ;;  %s5340_s15 = scalar_lea.hbm %s7070_s17, 32 }
0x1a1d   : > { %p5337_p10 = scmp.ne.s32.totalorder %s6943_s24, %s5336_s20  ;;  %p5341_p13 = scmp.lt.u32.totalorder %s6943_s24, %s7070_s17 }
0x1a1e   : > { %p5342_p0 = scmp.lt.u32.totalorder %s5340_s15, %s5336_s20  ;;  %p5344_p2 = scmp.lt.u32.totalorder %s5336_s20, %s6943_s24 }
0x1a1f   : > { %p5338_p11 = pnand %p5337_p10, %p5592_p5 }
0x1a20   : > { %p5343_p1 = por %p5342_p0, %p5341_p13 }
0x1a21   : > { %p5339_p12 = pneg %p5338_p11 }
0x1a22   : > { %p5345_p3 = por %p5344_p2, %p5343_p1 }
0x1a24   : > { %p5346_p4 = pnand %p5345_p3, %p5339_p12 }
0x1a26   : > { %5349 = shalt.err (!%p5346_p4)
}
0x1a27   : > { %4708 = dma.vmem_to_hbm [thread:$0]  (%p5592_p5), %s3981_s29, 16, %s6943_s24, %s3928_s21   ;;  %v3841_v49 = vld [vmem:[%s7066_s13] sm:$0x1]  ;;  %vm3912_vm12 = vcmask 57344  }
0x1a28   : > { %s582_s2 = scalar_lea.vmem [#allocation6], %s6901_s30  ;;  %s3919_s26 = sand.u32 1, %s5573_s28  }
0x1a29   : > { %s576_s20 = scalar_lea.vmem [#allocation4], %s6901_s30  ;;  %s3967_s18 = sshll.u32 %s582_s2, 4  ;;  %s6980_s18 = int_to_ptr.vmem [resolvable:$true] %s3967_s18 }
0x1a2a   : > { %s3954_s16 = sshll.u32 %s576_s20, 4  ;;  %s7097_s21 = sld [smem:[#allocation21_spill]]  ;;  %s6978_s16 = int_to_ptr.vmem [resolvable:$true] %s3954_s16 }
0x1a2b   : > { %s7098_s30 = sld [smem:[#allocation22_spill]]  ;;  %s5350_s22 = scalar_lea.vmem %s6978_s16, 16 }
0x1a2c   : > { %p5351_p7 = scmp.ne.s32.totalorder %s6978_s16, %s5350_s22  ;;  %s5460_s0 = smov [#allocation4]  }
0x1a2d   : > { %s5354_s24 = sshll.u32 %s5460_s0, 4  ;;  %s5355_s24 = int_to_ptr.vmem [resolvable:$false] %s5354_s24 }
0x1a2e   : > { %p5352_p8 = pnand %p5351_p7, %p5592_p5  ;;  %s5356_s29 = scalar_lea.vmem %s5355_s24, 32 }
0x1a2f   : > { %p5357_p10 = scmp.lt.s32.totalorder %s6978_s16, %s5355_s24  ;;  %p5358_p11 = scmp.lt.s32.totalorder %s5356_s29, %s5350_s22 }
0x1a30   : > { %s6976_s15 = scalar_lea.hbm %s7097_s21, %s6913_s23  ;;  %p5353_p9 = pneg %p5352_p8 }
0x1a31   : > { %s6986_s27 = scalar_lea.hbm %s7098_s30, %s6913_s23  ;;  %p5359_p12 = por %p5358_p11, %p5357_p10 }
0x1a33   : > { %p5360_p13 = pnand %p5359_p12, %p5353_p9 }
0x1a69   : > { %v3745_v53 = vpop.permute.xlu0 %3744 }
0x1a6a   : > { %3748 = vst.msk [vmem:[%s582_s2] sm:$0x1] %vm3747_vm10, %v3745_v53  ;;  %s6988_s2 = scalar_lea.sflag [#allocation5], %s3919_s26 }
0x1ace   : > { %v4564_v54 = vpop.f32.mrb[36].mxu1 }
0x1acf   : > { %v4565_v29 = vpop.f32.mrb[37].mxu1 }
0x1ad0   : > { %v4566_v42 = vadd.f32 %v4565_v29, %v4564_v54 }
0x1ad2   : > { %v3909_v57 = vadd.f32 %v4566_v42, %v3841_v49 }
0x1ad4   : > { %3913 = vst.msk [vmem:[%s576_s20] sm:$0x1] %vm3912_vm12, %v3909_v57 }
0x1ad5   : > { %5363 = shalt.err (!%p5360_p13)
}
0x1ad6   : > { %s5364_s23 = scalar_lea.hbm %s6976_s15, 16  ;;  %s5368_s28 = scalar_lea.hbm %s7097_s21, 32 }
0x1ad7   : > { %p5365_p0 = scmp.ne.s32.totalorder %s6976_s15, %s5364_s23  ;;  %p5369_p3 = scmp.lt.u32.totalorder %s6976_s15, %s7097_s21 }
0x1ad8   : > { %p5370_p4 = scmp.lt.u32.totalorder %s5368_s28, %s5364_s23  ;;  %p5372_p8 = scmp.lt.u32.totalorder %s5364_s23, %s6976_s15 }
0x1ad9   : > { %p5366_p1 = pnand %p5365_p0, %p5592_p5 }
0x1ada   : > { %p5371_p7 = por %p5370_p4, %p5369_p3 }
0x1adb   : > { %p5367_p2 = pneg %p5366_p1 }
0x1adc   : > { %p5373_p9 = por %p5372_p8, %p5371_p7 }
0x1ade   : > { %p5374_p10 = pnand %p5373_p9, %p5367_p2 }
0x1ae0   : > { %5377 = shalt.err (!%p5374_p10)
}
0x1ae1   : > { %4706 = dma.vmem_to_hbm [thread:$0]  (%p5592_p5), %s6978_s16, 16, %s6976_s15, %s6988_s2  }
0x1ae2   : > { %s5378_s22 = scalar_lea.vmem %s6980_s18, 16  ;;  %s5461_s24 = smov [#allocation6]  }
0x1ae3   : > { %p5379_p11 = scmp.ne.s32.totalorder %s6980_s18, %s5378_s22  ;;  %s5382_s29 = sshll.u32 %s5461_s24, 4  ;;  %s5383_s29 = int_to_ptr.vmem [resolvable:$false] %s5382_s29 }
0x1ae4   : > { %s5384_s23 = scalar_lea.vmem %s5383_s29, 32  ;;  %p5385_p0 = scmp.lt.s32.totalorder %s6980_s18, %s5383_s29 }
0x1ae5   : > { %p5380_p12 = pnand %p5379_p11, %p5592_p5  ;;  %p5386_p1 = scmp.lt.s32.totalorder %s5384_s23, %s5378_s22 }
0x1ae7   : > { %p5381_p13 = pneg %p5380_p12  ;;  %p5387_p2 = por %p5386_p1, %p5385_p0 }
0x1ae9   : > { %p5388_p3 = pnand %p5387_p2, %p5381_p13 }
0x1aeb   : > { %5391 = shalt.err (!%p5388_p3)
}
0x1aec   : > { %s5392_s16 = scalar_lea.hbm %s6986_s27, 16  ;;  %s5396_s20 = scalar_lea.hbm %s7098_s30, 32 }
0x1aed   : > { %p5393_p4 = scmp.ne.s32.totalorder %s6986_s27, %s5392_s16  ;;  %p5397_p9 = scmp.lt.u32.totalorder %s6986_s27, %s7098_s30 }
0x1aee   : > { %p5398_p10 = scmp.lt.u32.totalorder %s5396_s20, %s5392_s16  ;;  %p5400_p12 = scmp.lt.u32.totalorder %s5392_s16, %s6986_s27 }
0x1aef   : > { %p5394_p7 = pnand %p5393_p4, %p5592_p5 }
0x1af0   : > { %p5399_p11 = por %p5398_p10, %p5397_p9 }
0x1af1   : > { %p5395_p8 = pneg %p5394_p7 }
0x1af2   : > { %p5401_p13 = por %p5400_p12, %p5399_p11 }
0x1af4   : > { %p5402_p0 = pnand %p5401_p13, %p5395_p8 }
0x1af6   : > { %5405 = shalt.err (!%p5402_p0)
}
0x1af7   : > { %4707 = dma.vmem_to_hbm [thread:$0]  (%p5592_p5), %s6980_s18, 16, %s6986_s27, %s6988_s2  }
0x1af8 PF: > { %s7099_s0 = sld [smem:[#allocation14_spill]]  ;;  %s7100_s22 = sld [smem:[#allocation12_spill]] }
0x1afe   : > { %p4726_p1 = scmp.ge.s32.totalorder %s7099_s0, 2  ;;  %s3992_s29 = sand.u32 1, %s7100_s22  }
0x1aff   : > { %s3993_s23 = scalar_lea.sflag [#allocation3], %s3992_s29 }
0x1b00   : > { %p4714_p2 = pnand %p4726_p1, %p5596_p6 }
0x1b02   : > { %5423 = dma.done.wait (!%p4714_p2), %s3993_s23, 32  }
0x1b03   : > { %5425 = vsyncadd (!%p4714_p2), %s3993_s23, 4294967264  ;;  %s7102_s16 = sadd.s32 4294967294, %s7099_s0  }
0x1b04   : > { %s4001_s15 = sand.u32 1, %s7102_s16  }
0x1b05   : > { %s4002_s26 = scalar_lea.sflag [#allocation5], %s4001_s15 }
0x1b06   : > { %5427 = dma.done.wait (!%p4714_p2), %s4002_s26, 32  }
0x1b07   : > { %5429 = vsyncadd (!%p4714_p2), %s4002_s26, 4294967264  ;;  %s4018_s1 = scalar_lea.sflag [#allocation8], %s3992_s29 }
0x1b08   : > { %5431 = dma.done.wait (!%p4714_p2), %s4018_s1, 16  }
0x1b09   : > { %5433 = vsyncadd (!%p4714_p2), %s4018_s1, 4294967280  ;;  %s7103_s27 = sld [smem:[#allocation15_spill]]  ;;  %s7104_s18 = sld [smem:[#allocation13_spill]] }
0x1b0a   : > { %s7105_s26 = sld [smem:[#allocation16_spill]]  ;;  %s7106_s24 = smov %s5440_s25 }
0x1b0f   : > { %p34_p5 = scmp.ge.s32.totalorder %s7103_s27, 4   ;;  %s7107_s25 = smov %s7104_s18 }
0x1b11   :  { %36 = sbr.rel (!%p34_p5) target bundleno = 13 (0xd), region = 166 }
0x1b18   :  { %4022 = vsyncpa [#allocation3], 1 }
0x1b19   :  { %4024 = vsyncpa [#allocation3 + $0x1], 1 }
0x1b1a   :  { %4025 = vsyncpa [#allocation5], 1 }
0x1b1b   :  { %4027 = vsyncpa [#allocation5 + $0x1], 1 }
0x1b1c   :  { %4028 = vsyncpa [#allocation8], 1 }
0x1b1d   :  { %4030 = vsyncpa [#allocation8 + $0x1], 1 }

</bundles_post_ra>
